<compile_context>
chip_gen: v6e
topology: v6e:2x2x1
jax: 0.10.0
libtpu: 0.0.40
codegen_flags: <defaults>
</compile_context>

<pallas_src>
import functools
import math

import jax
import jax.numpy as jnp
from jax.experimental import pallas as pl
from jax.experimental.pallas import tpu as pltpu


def encoder_layer_kernel(
    x_ref,
    wq_ref, bq_ref, wk_ref, bk_ref, wv_ref, bv_ref, wo_ref, bo_ref,
    g1_ref, be1_ref, g2_ref, be2_ref,
    wf1_ref, bf1_ref, wf2_ref, bf2_ref,
    o_ref,
    *, num_heads, e_real, eps=1e-5,
):
    """One grid step = one batch element: full (S, Ep) slab resident in VMEM."""
    f32 = jnp.float32
    bf16 = jnp.bfloat16

    x = x_ref[0].astype(f32)                       # (S, Ep); cols >= e_real are zero
    S, Ep = x.shape
    dh = e_real // num_heads
    inv_e = 1.0 / e_real                           # normalize over the REAL embed dim

    def layer_norm(y, g, b):
        # one-pass mean/variance (biased, matches torch.nn.LayerNorm, eps=1e-5);
        # zero-padded lanes contribute 0 to both sums and g/b are zero-padded.
        s1 = jnp.sum(y, axis=-1, keepdims=True)
        s2 = jnp.sum(y * y, axis=-1, keepdims=True)
        mu = s1 * inv_e
        var = s2 * inv_e - mu * mu
        return (y - mu) * jax.lax.rsqrt(var + eps) * g + b

    # ---------------- norm1 + Q/K/V projections (bf16 in, f32 acc) ----------------
    x2 = layer_norm(x, g1_ref[...], be1_ref[...])
    x2b = x2.astype(bf16)
    q = jnp.dot(x2b, wq_ref[...], preferred_element_type=f32) + bq_ref[...]
    k = jnp.dot(x2b, wk_ref[...], preferred_element_type=f32) + bk_ref[...]
    v = jnp.dot(x2b, wv_ref[...], preferred_element_type=f32) + bv_ref[...]

    wo = wo_ref[...]                               # (Ep, Ep) bf16

    # ---------------- multi-head self-attention ----------------
    # head h <-> contiguous embedding slice [h*dh : (h+1)*dh] (matches view+transpose).
    # Per-head PV results are folded directly into the output projection
    # (attn @ Wo == sum_h ctx_h @ Wo[h*dh:(h+1)*dh, :]) -> no concat, lane-dense acc.
    # TODO(synk): optional attention mask (mask=None path only) not wired in.
    acc = jnp.zeros((S, Ep), f32)
    for h in range(num_heads):
        lo = h * dh
        qh = q[:, lo:lo + dh]                      # scale folded into wq/bq wrapper-side
        kh = k[:, lo:lo + dh]
        vh = v[:, lo:lo + dh]
        s = jnp.dot(qh.astype(bf16), kh.T.astype(bf16), preferred_element_type=f32)
        s = s - jnp.max(s, axis=-1, keepdims=True)
        p = jnp.exp(s)
        p = p * pl.reciprocal(jnp.sum(p, axis=-1, keepdims=True), approx=True)
        ctx = jnp.dot(p.astype(bf16), vh.astype(bf16), preferred_element_type=f32)
        acc = acc + jnp.dot(ctx.astype(bf16), wo[lo:lo + dh, :],
                            preferred_element_type=f32)

    x = x + acc + bo_ref[...]                      # residual 1 (dropout = identity)

    # ---------------- norm2 + feed-forward ----------------
    x2b = layer_norm(x, g2_ref[...], be2_ref[...]).astype(bf16)
    h1 = jnp.dot(x2b, wf1_ref[...], preferred_element_type=f32) + bf1_ref[...]
    h1b = jnp.maximum(h1, 0.0).astype(bf16)
    ff = jnp.dot(h1b, wf2_ref[...], preferred_element_type=f32) + bf2_ref[...]

    o_ref[0] = (x + ff).astype(o_ref.dtype)        # residual 2 (dropout = identity)


def _round_up(x, m):
    return ((x + m - 1) // m) * m


def encoder_layer(x, params, *, num_heads):
    B, S, E = x.shape
    FF = params["wf1"].shape[1]
    dh = E // num_heads
    Ep = _round_up(E, 128)                          # lane-dense embedding dim
    FFp = _round_up(FF, 128)                        # lane-dense FF dim
    scale = 1.0 / math.sqrt(dh)

    f32, bf16 = jnp.float32, jnp.bfloat16

    def pad2(a, rows, cols):
        return jnp.pad(a, ((0, rows - a.shape[0]), (0, cols - a.shape[1])))

    # Matmul weights -> bf16 (halves VMEM, MXU-native); biases/gamma/beta stay f32.
    # Zero padding keeps the math exactly equivalent (padded lanes stay zero).
    wq = pad2(params["wq"] * scale, Ep, Ep).astype(bf16)
    bq = pad2(params["bq"] * scale, 1, Ep).astype(f32)
    wk = pad2(params["wk"], Ep, Ep).astype(bf16)
    bk = pad2(params["bk"], 1, Ep).astype(f32)
    wv = pad2(params["wv"], Ep, Ep).astype(bf16)
    bv = pad2(params["bv"], 1, Ep).astype(f32)
    wo = pad2(params["wo"], Ep, Ep).astype(bf16)
    bo = pad2(params["bo"], 1, Ep).astype(f32)
    g1 = pad2(params["g1"], 1, Ep).astype(f32)
    be1 = pad2(params["be1"], 1, Ep).astype(f32)
    g2 = pad2(params["g2"], 1, Ep).astype(f32)
    be2 = pad2(params["be2"], 1, Ep).astype(f32)
    wf1 = pad2(params["wf1"], Ep, FFp).astype(bf16)
    bf1 = pad2(params["bf1"], 1, FFp).astype(f32)
    wf2 = pad2(params["wf2"], FFp, Ep).astype(bf16)
    bf2 = pad2(params["bf2"], 1, Ep).astype(f32)

    xp = jnp.pad(x.astype(f32), ((0, 0), (0, 0), (0, Ep - E)))

    param_vals = [wq, bq, wk, bk, wv, bv, wo, bo,
                  g1, be1, g2, be2, wf1, bf1, wf2, bf2]

    def full_spec(a):
        nd = a.ndim
        return pl.BlockSpec(a.shape, lambda b, _nd=nd: (0,) * _nd)

    kernel = functools.partial(encoder_layer_kernel, num_heads=num_heads, e_real=E)

    out = pl.pallas_call(
        kernel,
        out_shape=jax.ShapeDtypeStruct((B, S, Ep), jnp.float32),
        grid_spec=pltpu.PrefetchScalarGridSpec(
            num_scalar_prefetch=0,
            grid=(B,),
            in_specs=[pl.BlockSpec((1, S, Ep), lambda b: (b, 0, 0))]
            + [full_spec(p) for p in param_vals],
            out_specs=pl.BlockSpec((1, S, Ep), lambda b: (b, 0, 0)),
        ),
        compiler_params=pltpu.CompilerParams(
            dimension_semantics=("parallel",),
            vmem_limit_bytes=32 * 1024 * 1024,
        ),
    )(xp, *param_vals)

    return out[..., :E].astype(x.dtype)


# ------------------------- pure-JAX reference for validation -------------------------
def reference(x, params, *, num_heads, eps=1e-5):
    def ln(x, g, b):
        mu = jnp.mean(x, axis=-1, keepdims=True)
        var = jnp.mean((x - mu) ** 2, axis=-1, keepdims=True)
        return (x - mu) / jnp.sqrt(var + eps) * g + b

    B, S, E = x.shape
    dh = E // num_heads
    x2 = ln(x, params["g1"], params["be1"])
    q = x2 @ params["wq"] + params["bq"]
    k = x2 @ params["wk"] + params["bk"]
    v = x2 @ params["wv"] + params["bv"]
    q = q.reshape(B, S, num_heads, dh).transpose(0, 2, 1, 3)
    k = k.reshape(B, S, num_heads, dh).transpose(0, 2, 1, 3)
    v = v.reshape(B, S, num_heads, dh).transpose(0, 2, 1, 3)
    attn = jnp.einsum("bhqd,bhkd->bhqk", q / math.sqrt(dh), k)
    attn = jax.nn.softmax(attn, axis=-1)
    o = jnp.einsum("bhqk,bhkd->bhqd", attn, v)
    o = o.transpose(0, 2, 1, 3).reshape(B, S, E)
    o = o @ params["wo"] + params["bo"]
    x = x + o
    x2 = ln(x, params["g2"], params["be2"])
    ff = jnp.maximum(x2 @ params["wf1"] + params["bf1"], 0.0) @ params["wf2"] + params["bf2"]
    return x + ff


if __name__ == "__main__":
    B, S, E, H, FF = 2, 8, 32, 4, 64

    key = jax.random.PRNGKey(0)
    ks = jax.random.split(key, 12)

    def lin(k, fan_in, fan_out):
        bound = 1.0 / math.sqrt(fan_in)
        kw, kb = jax.random.split(k)
        w = jax.random.uniform(kw, (fan_in, fan_out), jnp.float32, -bound, bound)
        b = jax.random.uniform(kb, (1, fan_out), jnp.float32, -bound, bound)
        return w, b

    wq, bq = lin(ks[0], E, E)
    wk, bk = lin(ks[1], E, E)
    wv, bv = lin(ks[2], E, E)
    wo, bo = lin(ks[3], E, E)
    wf1, bf1 = lin(ks[4], E, FF)
    wf2, bf2 = lin(ks[5], FF, E)

    params = dict(
        wq=wq, bq=bq, wk=wk, bk=bk, wv=wv, bv=bv, wo=wo, bo=bo,
        g1=jnp.ones((1, E), jnp.float32), be1=jnp.zeros((1, E), jnp.float32),
        g2=jnp.ones((1, E), jnp.float32), be2=jnp.zeros((1, E), jnp.float32),
        wf1=wf1, bf1=bf1, wf2=wf2, bf2=bf2,
    )

    x = jax.random.normal(ks[6], (B, S, E), jnp.float32)

    out = encoder_layer(x, params, num_heads=H)
    out = jax.block_until_ready(out)

    ref = reference(x, params, num_heads=H)
    assert out.shape == (B, S, E)
    # bf16 matmul inputs (f32 accumulation) -> compare against f32 reference loosely.
    assert jnp.allclose(out, ref, atol=5e-2, rtol=5e-2), float(jnp.max(jnp.abs(out - ref)))

    print("KERNEL_OK")
</pallas_src>

<mosaic_0001>
module attributes {stable_mosaic.version = 11 : i64} {
  func.func @encoder_layer_kernel(%arg0: i32, %arg1: memref<1x8x128xf32, #tpu.memory_space<vmem>>, %arg2: memref<128x128xbf16, #tpu.memory_space<vmem>>, %arg3: memref<1x128xf32, #tpu.memory_space<vmem>>, %arg4: memref<128x128xbf16, #tpu.memory_space<vmem>>, %arg5: memref<1x128xf32, #tpu.memory_space<vmem>>, %arg6: memref<128x128xbf16, #tpu.memory_space<vmem>>, %arg7: memref<1x128xf32, #tpu.memory_space<vmem>>, %arg8: memref<128x128xbf16, #tpu.memory_space<vmem>>, %arg9: memref<1x128xf32, #tpu.memory_space<vmem>>, %arg10: memref<1x128xf32, #tpu.memory_space<vmem>>, %arg11: memref<1x128xf32, #tpu.memory_space<vmem>>, %arg12: memref<1x128xf32, #tpu.memory_space<vmem>>, %arg13: memref<1x128xf32, #tpu.memory_space<vmem>>, %arg14: memref<128x128xbf16, #tpu.memory_space<vmem>>, %arg15: memref<1x128xf32, #tpu.memory_space<vmem>>, %arg16: memref<128x128xbf16, #tpu.memory_space<vmem>>, %arg17: memref<1x128xf32, #tpu.memory_space<vmem>>, %arg18: memref<1x8x128xf32, #tpu.memory_space<vmem>>) attributes {dimension_semantics = [#tpu.dimension_semantics<parallel>], iteration_bounds = array<i64: 2>, scalar_prefetch = 0 : i64, scratch_operands = 0 : i64, tpu.core_type = #tpu.core_type<tc>, window_params = [{transform_indices = @transform_0, window_bounds = array<i64: 1, 8, 128>}, {pipeline_mode = #tpu.pipeline_mode<synchronous>, transform_indices = @transform_1, window_bounds = array<i64: 128, 128>}, {pipeline_mode = #tpu.pipeline_mode<synchronous>, transform_indices = @transform_2, window_bounds = array<i64: 1, 128>}, {pipeline_mode = #tpu.pipeline_mode<synchronous>, transform_indices = @transform_3, window_bounds = array<i64: 128, 128>}, {pipeline_mode = #tpu.pipeline_mode<synchronous>, transform_indices = @transform_4, window_bounds = array<i64: 1, 128>}, {pipeline_mode = #tpu.pipeline_mode<synchronous>, transform_indices = @transform_5, window_bounds = array<i64: 128, 128>}, {pipeline_mode = #tpu.pipeline_mode<synchronous>, transform_indices = @transform_6, window_bounds = array<i64: 1, 128>}, {pipeline_mode = #tpu.pipeline_mode<synchronous>, transform_indices = @transform_7, window_bounds = array<i64: 128, 128>}, {pipeline_mode = #tpu.pipeline_mode<synchronous>, transform_indices = @transform_8, window_bounds = array<i64: 1, 128>}, {pipeline_mode = #tpu.pipeline_mode<synchronous>, transform_indices = @transform_9, window_bounds = array<i64: 1, 128>}, {pipeline_mode = #tpu.pipeline_mode<synchronous>, transform_indices = @transform_10, window_bounds = array<i64: 1, 128>}, {pipeline_mode = #tpu.pipeline_mode<synchronous>, transform_indices = @transform_11, window_bounds = array<i64: 1, 128>}, {pipeline_mode = #tpu.pipeline_mode<synchronous>, transform_indices = @transform_12, window_bounds = array<i64: 1, 128>}, {pipeline_mode = #tpu.pipeline_mode<synchronous>, transform_indices = @transform_13, window_bounds = array<i64: 128, 128>}, {pipeline_mode = #tpu.pipeline_mode<synchronous>, transform_indices = @transform_14, window_bounds = array<i64: 1, 128>}, {pipeline_mode = #tpu.pipeline_mode<synchronous>, transform_indices = @transform_15, window_bounds = array<i64: 128, 128>}, {pipeline_mode = #tpu.pipeline_mode<synchronous>, transform_indices = @transform_16, window_bounds = array<i64: 1, 128>}, {transform_indices = @transform_17, window_bounds = array<i64: 1, 8, 128>}]} {
    %c0 = arith.constant 0 : index
    %c0_0 = arith.constant 0 : index
    %c0_1 = arith.constant 0 : index
    %0 = vector.load %arg1[%c0, %c0_0, %c0_1] : memref<1x8x128xf32, #tpu.memory_space<vmem>>, vector<1x8x128xf32>
    %1 = vector.shape_cast %0 : vector<1x8x128xf32> to vector<8x128xf32>
    %c0_2 = arith.constant 0 : index
    %c0_3 = arith.constant 0 : index
    %2 = vector.load %arg10[%c0_2, %c0_3] : memref<1x128xf32, #tpu.memory_space<vmem>>, vector<1x128xf32>
    %c0_4 = arith.constant 0 : index
    %c0_5 = arith.constant 0 : index
    %3 = vector.load %arg11[%c0_4, %c0_5] : memref<1x128xf32, #tpu.memory_space<vmem>>, vector<1x128xf32>
    %cst = arith.constant dense<0.000000e+00> : vector<8xf32>
    %4 = vector.multi_reduction <add>, %1, %cst [1] : vector<8x128xf32> to vector<8xf32>
    %5 = vector.shape_cast %4 : vector<8xf32> to vector<8x1xf32>
    %6 = arith.mulf %1, %1 : vector<8x128xf32>
    %cst_6 = arith.constant dense<0.000000e+00> : vector<8xf32>
    %7 = vector.multi_reduction <add>, %6, %cst_6 [1] : vector<8x128xf32> to vector<8xf32>
    %8 = vector.shape_cast %7 : vector<8xf32> to vector<8x1xf32>
    %cst_7 = arith.constant 3.125000e-02 : f32
    %9 = vector.broadcast %cst_7 : f32 to vector<8x1xf32>
    %10 = arith.mulf %5, %9 : vector<8x1xf32>
    %cst_8 = arith.constant 3.125000e-02 : f32
    %11 = vector.broadcast %cst_8 : f32 to vector<8x1xf32>
    %12 = arith.mulf %8, %11 : vector<8x1xf32>
    %13 = arith.mulf %10, %10 : vector<8x1xf32>
    %14 = arith.subf %12, %13 : vector<8x1xf32>
    %15 = vector.broadcast %10 : vector<8x1xf32> to vector<8x128xf32>
    %16 = arith.subf %1, %15 : vector<8x128xf32>
    %cst_9 = arith.constant 9.99999974E-6 : f32
    %17 = vector.broadcast %cst_9 : f32 to vector<8x1xf32>
    %18 = arith.addf %14, %17 : vector<8x1xf32>
    %19 = math.rsqrt %18 : vector<8x1xf32>
    %20 = vector.broadcast %19 : vector<8x1xf32> to vector<8x128xf32>
    %21 = arith.mulf %16, %20 : vector<8x128xf32>
    %22 = vector.broadcast %2 : vector<1x128xf32> to vector<8x128xf32>
    %23 = arith.mulf %21, %22 : vector<8x128xf32>
    %24 = vector.broadcast %3 : vector<1x128xf32> to vector<8x128xf32>
    %25 = arith.addf %23, %24 : vector<8x128xf32>
    %26 = arith.truncf %25 : vector<8x128xf32> to vector<8x128xbf16>
    %c0_10 = arith.constant 0 : index
    %c0_11 = arith.constant 0 : index
    %27 = vector.load %arg2[%c0_10, %c0_11] : memref<128x128xbf16, #tpu.memory_space<vmem>>, vector<128x128xbf16>
    %cst_12 = arith.constant dense<0.000000e+00> : vector<8x128xf32>
    %28 = tpu.matmul %26, %27, %cst_12 {dimension_numbers = #tpu.dot_dimension_numbers<[1], [0], [0], [1], [0, 0, 1, 1], [], []>} : vector<8x128xbf16>, vector<128x128xbf16>, vector<8x128xf32> -> vector<8x128xf32>
    %c0_13 = arith.constant 0 : index
    %c0_14 = arith.constant 0 : index
    %29 = vector.load %arg3[%c0_13, %c0_14] : memref<1x128xf32, #tpu.memory_space<vmem>>, vector<1x128xf32>
    %30 = vector.broadcast %29 : vector<1x128xf32> to vector<8x128xf32>
    %31 = arith.addf %28, %30 : vector<8x128xf32>
    %c0_15 = arith.constant 0 : index
    %c0_16 = arith.constant 0 : index
    %32 = vector.load %arg4[%c0_15, %c0_16] : memref<128x128xbf16, #tpu.memory_space<vmem>>, vector<128x128xbf16>
    %cst_17 = arith.constant dense<0.000000e+00> : vector<8x128xf32>
    %33 = tpu.matmul %26, %32, %cst_17 {dimension_numbers = #tpu.dot_dimension_numbers<[1], [0], [0], [1], [0, 0, 1, 1], [], []>} : vector<8x128xbf16>, vector<128x128xbf16>, vector<8x128xf32> -> vector<8x128xf32>
    %c0_18 = arith.constant 0 : index
    %c0_19 = arith.constant 0 : index
    %34 = vector.load %arg5[%c0_18, %c0_19] : memref<1x128xf32, #tpu.memory_space<vmem>>, vector<1x128xf32>
    %35 = vector.broadcast %34 : vector<1x128xf32> to vector<8x128xf32>
    %36 = arith.addf %33, %35 : vector<8x128xf32>
    %c0_20 = arith.constant 0 : index
    %c0_21 = arith.constant 0 : index
    %37 = vector.load %arg6[%c0_20, %c0_21] : memref<128x128xbf16, #tpu.memory_space<vmem>>, vector<128x128xbf16>
    %cst_22 = arith.constant dense<0.000000e+00> : vector<8x128xf32>
    %38 = tpu.matmul %26, %37, %cst_22 {dimension_numbers = #tpu.dot_dimension_numbers<[1], [0], [0], [1], [0, 0, 1, 1], [], []>} : vector<8x128xbf16>, vector<128x128xbf16>, vector<8x128xf32> -> vector<8x128xf32>
    %c0_23 = arith.constant 0 : index
    %c0_24 = arith.constant 0 : index
    %39 = vector.load %arg7[%c0_23, %c0_24] : memref<1x128xf32, #tpu.memory_space<vmem>>, vector<1x128xf32>
    %40 = vector.broadcast %39 : vector<1x128xf32> to vector<8x128xf32>
    %41 = arith.addf %38, %40 : vector<8x128xf32>
    %c0_25 = arith.constant 0 : index
    %c0_26 = arith.constant 0 : index
    %42 = vector.load %arg8[%c0_25, %c0_26] : memref<128x128xbf16, #tpu.memory_space<vmem>>, vector<128x128xbf16>
    %cst_27 = arith.constant 0.000000e+00 : f32
    %43 = vector.broadcast %cst_27 : f32 to vector<8x128xf32>
    %44 = vector.extract_strided_slice %31 {offsets = [0, 0], sizes = [8, 8], strides = [1, 1]} : vector<8x128xf32> to vector<8x8xf32>
    %45 = vector.extract_strided_slice %36 {offsets = [0, 0], sizes = [8, 8], strides = [1, 1]} : vector<8x128xf32> to vector<8x8xf32>
    %46 = vector.extract_strided_slice %41 {offsets = [0, 0], sizes = [8, 8], strides = [1, 1]} : vector<8x128xf32> to vector<8x8xf32>
    %47 = arith.truncf %44 : vector<8x8xf32> to vector<8x8xbf16>
    %48 = tpu.transpose %45, [1, 0] : vector<8x8xf32> -> vector<8x8xf32>
    %49 = arith.truncf %48 : vector<8x8xf32> to vector<8x8xbf16>
    %cst_28 = arith.constant dense<0.000000e+00> : vector<8x8xf32>
    %50 = tpu.matmul %47, %49, %cst_28 {dimension_numbers = #tpu.dot_dimension_numbers<[1], [0], [0], [1], [0, 0, 1, 1], [], []>} : vector<8x8xbf16>, vector<8x8xbf16>, vector<8x8xf32> -> vector<8x8xf32>
    %cst_29 = arith.constant dense<0xFF800000> : vector<8xf32>
    %51 = vector.multi_reduction <maximumf>, %50, %cst_29 [1] : vector<8x8xf32> to vector<8xf32>
    %52 = vector.shape_cast %51 : vector<8xf32> to vector<8x1xf32>
    %53 = vector.broadcast %52 : vector<8x1xf32> to vector<8x8xf32>
    %54 = arith.subf %50, %53 : vector<8x8xf32>
    %55 = math.exp %54 : vector<8x8xf32>
    %cst_30 = arith.constant dense<0.000000e+00> : vector<8xf32>
    %56 = vector.multi_reduction <add>, %55, %cst_30 [1] : vector<8x8xf32> to vector<8xf32>
    %57 = vector.shape_cast %56 : vector<8xf32> to vector<8x1xf32>
    %58 = tpu.reciprocal %57 {approx = true} : vector<8x1xf32> -> vector<8x1xf32>
    %59 = vector.broadcast %58 : vector<8x1xf32> to vector<8x8xf32>
    %60 = arith.mulf %55, %59 : vector<8x8xf32>
    %61 = arith.truncf %60 : vector<8x8xf32> to vector<8x8xbf16>
    %62 = arith.truncf %46 : vector<8x8xf32> to vector<8x8xbf16>
    %cst_31 = arith.constant dense<0.000000e+00> : vector<8x8xf32>
    %63 = tpu.matmul %61, %62, %cst_31 {dimension_numbers = #tpu.dot_dimension_numbers<[1], [0], [0], [1], [0, 0, 1, 1], [], []>} : vector<8x8xbf16>, vector<8x8xbf16>, vector<8x8xf32> -> vector<8x8xf32>
    %64 = arith.truncf %63 : vector<8x8xf32> to vector<8x8xbf16>
    %65 = vector.extract_strided_slice %42 {offsets = [0, 0], sizes = [8, 128], strides = [1, 1]} : vector<128x128xbf16> to vector<8x128xbf16>
    %cst_32 = arith.constant dense<0.000000e+00> : vector<8x128xf32>
    %66 = tpu.matmul %64, %65, %cst_32 {dimension_numbers = #tpu.dot_dimension_numbers<[1], [0], [0], [1], [0, 0, 1, 1], [], []>} : vector<8x8xbf16>, vector<8x128xbf16>, vector<8x128xf32> -> vector<8x128xf32>
    %67 = arith.addf %43, %66 : vector<8x128xf32>
    %68 = vector.extract_strided_slice %31 {offsets = [0, 8], sizes = [8, 8], strides = [1, 1]} : vector<8x128xf32> to vector<8x8xf32>
    %69 = vector.extract_strided_slice %36 {offsets = [0, 8], sizes = [8, 8], strides = [1, 1]} : vector<8x128xf32> to vector<8x8xf32>
    %70 = vector.extract_strided_slice %41 {offsets = [0, 8], sizes = [8, 8], strides = [1, 1]} : vector<8x128xf32> to vector<8x8xf32>
    %71 = arith.truncf %68 : vector<8x8xf32> to vector<8x8xbf16>
    %72 = tpu.transpose %69, [1, 0] : vector<8x8xf32> -> vector<8x8xf32>
    %73 = arith.truncf %72 : vector<8x8xf32> to vector<8x8xbf16>
    %cst_33 = arith.constant dense<0.000000e+00> : vector<8x8xf32>
    %74 = tpu.matmul %71, %73, %cst_33 {dimension_numbers = #tpu.dot_dimension_numbers<[1], [0], [0], [1], [0, 0, 1, 1], [], []>} : vector<8x8xbf16>, vector<8x8xbf16>, vector<8x8xf32> -> vector<8x8xf32>
    %cst_34 = arith.constant dense<0xFF800000> : vector<8xf32>
    %75 = vector.multi_reduction <maximumf>, %74, %cst_34 [1] : vector<8x8xf32> to vector<8xf32>
    %76 = vector.shape_cast %75 : vector<8xf32> to vector<8x1xf32>
    %77 = vector.broadcast %76 : vector<8x1xf32> to vector<8x8xf32>
    %78 = arith.subf %74, %77 : vector<8x8xf32>
    %79 = math.exp %78 : vector<8x8xf32>
    %cst_35 = arith.constant dense<0.000000e+00> : vector<8xf32>
    %80 = vector.multi_reduction <add>, %79, %cst_35 [1] : vector<8x8xf32> to vector<8xf32>
    %81 = vector.shape_cast %80 : vector<8xf32> to vector<8x1xf32>
    %82 = tpu.reciprocal %81 {approx = true} : vector<8x1xf32> -> vector<8x1xf32>
    %83 = vector.broadcast %82 : vector<8x1xf32> to vector<8x8xf32>
    %84 = arith.mulf %79, %83 : vector<8x8xf32>
    %85 = arith.truncf %84 : vector<8x8xf32> to vector<8x8xbf16>
    %86 = arith.truncf %70 : vector<8x8xf32> to vector<8x8xbf16>
    %cst_36 = arith.constant dense<0.000000e+00> : vector<8x8xf32>
    %87 = tpu.matmul %85, %86, %cst_36 {dimension_numbers = #tpu.dot_dimension_numbers<[1], [0], [0], [1], [0, 0, 1, 1], [], []>} : vector<8x8xbf16>, vector<8x8xbf16>, vector<8x8xf32> -> vector<8x8xf32>
    %88 = arith.truncf %87 : vector<8x8xf32> to vector<8x8xbf16>
    %89 = vector.extract_strided_slice %42 {offsets = [8, 0], sizes = [8, 128], strides = [1, 1]} : vector<128x128xbf16> to vector<8x128xbf16>
    %cst_37 = arith.constant dense<0.000000e+00> : vector<8x128xf32>
    %90 = tpu.matmul %88, %89, %cst_37 {dimension_numbers = #tpu.dot_dimension_numbers<[1], [0], [0], [1], [0, 0, 1, 1], [], []>} : vector<8x8xbf16>, vector<8x128xbf16>, vector<8x128xf32> -> vector<8x128xf32>
    %91 = arith.addf %67, %90 : vector<8x128xf32>
    %92 = vector.extract_strided_slice %31 {offsets = [0, 16], sizes = [8, 8], strides = [1, 1]} : vector<8x128xf32> to vector<8x8xf32>
    %93 = vector.extract_strided_slice %36 {offsets = [0, 16], sizes = [8, 8], strides = [1, 1]} : vector<8x128xf32> to vector<8x8xf32>
    %94 = vector.extract_strided_slice %41 {offsets = [0, 16], sizes = [8, 8], strides = [1, 1]} : vector<8x128xf32> to vector<8x8xf32>
    %95 = arith.truncf %92 : vector<8x8xf32> to vector<8x8xbf16>
    %96 = tpu.transpose %93, [1, 0] : vector<8x8xf32> -> vector<8x8xf32>
    %97 = arith.truncf %96 : vector<8x8xf32> to vector<8x8xbf16>
    %cst_38 = arith.constant dense<0.000000e+00> : vector<8x8xf32>
    %98 = tpu.matmul %95, %97, %cst_38 {dimension_numbers = #tpu.dot_dimension_numbers<[1], [0], [0], [1], [0, 0, 1, 1], [], []>} : vector<8x8xbf16>, vector<8x8xbf16>, vector<8x8xf32> -> vector<8x8xf32>
    %cst_39 = arith.constant dense<0xFF800000> : vector<8xf32>
    %99 = vector.multi_reduction <maximumf>, %98, %cst_39 [1] : vector<8x8xf32> to vector<8xf32>
    %100 = vector.shape_cast %99 : vector<8xf32> to vector<8x1xf32>
    %101 = vector.broadcast %100 : vector<8x1xf32> to vector<8x8xf32>
    %102 = arith.subf %98, %101 : vector<8x8xf32>
    %103 = math.exp %102 : vector<8x8xf32>
    %cst_40 = arith.constant dense<0.000000e+00> : vector<8xf32>
    %104 = vector.multi_reduction <add>, %103, %cst_40 [1] : vector<8x8xf32> to vector<8xf32>
    %105 = vector.shape_cast %104 : vector<8xf32> to vector<8x1xf32>
    %106 = tpu.reciprocal %105 {approx = true} : vector<8x1xf32> -> vector<8x1xf32>
    %107 = vector.broadcast %106 : vector<8x1xf32> to vector<8x8xf32>
    %108 = arith.mulf %103, %107 : vector<8x8xf32>
    %109 = arith.truncf %108 : vector<8x8xf32> to vector<8x8xbf16>
    %110 = arith.truncf %94 : vector<8x8xf32> to vector<8x8xbf16>
    %cst_41 = arith.constant dense<0.000000e+00> : vector<8x8xf32>
    %111 = tpu.matmul %109, %110, %cst_41 {dimension_numbers = #tpu.dot_dimension_numbers<[1], [0], [0], [1], [0, 0, 1, 1], [], []>} : vector<8x8xbf16>, vector<8x8xbf16>, vector<8x8xf32> -> vector<8x8xf32>
    %112 = arith.truncf %111 : vector<8x8xf32> to vector<8x8xbf16>
    %113 = vector.extract_strided_slice %42 {offsets = [16, 0], sizes = [8, 128], strides = [1, 1]} : vector<128x128xbf16> to vector<8x128xbf16>
    %cst_42 = arith.constant dense<0.000000e+00> : vector<8x128xf32>
    %114 = tpu.matmul %112, %113, %cst_42 {dimension_numbers = #tpu.dot_dimension_numbers<[1], [0], [0], [1], [0, 0, 1, 1], [], []>} : vector<8x8xbf16>, vector<8x128xbf16>, vector<8x128xf32> -> vector<8x128xf32>
    %115 = arith.addf %91, %114 : vector<8x128xf32>
    %116 = vector.extract_strided_slice %31 {offsets = [0, 24], sizes = [8, 8], strides = [1, 1]} : vector<8x128xf32> to vector<8x8xf32>
    %117 = vector.extract_strided_slice %36 {offsets = [0, 24], sizes = [8, 8], strides = [1, 1]} : vector<8x128xf32> to vector<8x8xf32>
    %118 = vector.extract_strided_slice %41 {offsets = [0, 24], sizes = [8, 8], strides = [1, 1]} : vector<8x128xf32> to vector<8x8xf32>
    %119 = arith.truncf %116 : vector<8x8xf32> to vector<8x8xbf16>
    %120 = tpu.transpose %117, [1, 0] : vector<8x8xf32> -> vector<8x8xf32>
    %121 = arith.truncf %120 : vector<8x8xf32> to vector<8x8xbf16>
    %cst_43 = arith.constant dense<0.000000e+00> : vector<8x8xf32>
    %122 = tpu.matmul %119, %121, %cst_43 {dimension_numbers = #tpu.dot_dimension_numbers<[1], [0], [0], [1], [0, 0, 1, 1], [], []>} : vector<8x8xbf16>, vector<8x8xbf16>, vector<8x8xf32> -> vector<8x8xf32>
    %cst_44 = arith.constant dense<0xFF800000> : vector<8xf32>
    %123 = vector.multi_reduction <maximumf>, %122, %cst_44 [1] : vector<8x8xf32> to vector<8xf32>
    %124 = vector.shape_cast %123 : vector<8xf32> to vector<8x1xf32>
    %125 = vector.broadcast %124 : vector<8x1xf32> to vector<8x8xf32>
    %126 = arith.subf %122, %125 : vector<8x8xf32>
    %127 = math.exp %126 : vector<8x8xf32>
    %cst_45 = arith.constant dense<0.000000e+00> : vector<8xf32>
    %128 = vector.multi_reduction <add>, %127, %cst_45 [1] : vector<8x8xf32> to vector<8xf32>
    %129 = vector.shape_cast %128 : vector<8xf32> to vector<8x1xf32>
    %130 = tpu.reciprocal %129 {approx = true} : vector<8x1xf32> -> vector<8x1xf32>
    %131 = vector.broadcast %130 : vector<8x1xf32> to vector<8x8xf32>
    %132 = arith.mulf %127, %131 : vector<8x8xf32>
    %133 = arith.truncf %132 : vector<8x8xf32> to vector<8x8xbf16>
    %134 = arith.truncf %118 : vector<8x8xf32> to vector<8x8xbf16>
    %cst_46 = arith.constant dense<0.000000e+00> : vector<8x8xf32>
    %135 = tpu.matmul %133, %134, %cst_46 {dimension_numbers = #tpu.dot_dimension_numbers<[1], [0], [0], [1], [0, 0, 1, 1], [], []>} : vector<8x8xbf16>, vector<8x8xbf16>, vector<8x8xf32> -> vector<8x8xf32>
    %136 = arith.truncf %135 : vector<8x8xf32> to vector<8x8xbf16>
    %137 = vector.extract_strided_slice %42 {offsets = [24, 0], sizes = [8, 128], strides = [1, 1]} : vector<128x128xbf16> to vector<8x128xbf16>
    %cst_47 = arith.constant dense<0.000000e+00> : vector<8x128xf32>
    %138 = tpu.matmul %136, %137, %cst_47 {dimension_numbers = #tpu.dot_dimension_numbers<[1], [0], [0], [1], [0, 0, 1, 1], [], []>} : vector<8x8xbf16>, vector<8x128xbf16>, vector<8x128xf32> -> vector<8x128xf32>
    %139 = arith.addf %115, %138 : vector<8x128xf32>
    %140 = arith.addf %1, %139 : vector<8x128xf32>
    %c0_48 = arith.constant 0 : index
    %c0_49 = arith.constant 0 : index
    %141 = vector.load %arg9[%c0_48, %c0_49] : memref<1x128xf32, #tpu.memory_space<vmem>>, vector<1x128xf32>
    %142 = vector.broadcast %141 : vector<1x128xf32> to vector<8x128xf32>
    %143 = arith.addf %140, %142 : vector<8x128xf32>
    %c0_50 = arith.constant 0 : index
    %c0_51 = arith.constant 0 : index
    %144 = vector.load %arg12[%c0_50, %c0_51] : memref<1x128xf32, #tpu.memory_space<vmem>>, vector<1x128xf32>
    %c0_52 = arith.constant 0 : index
    %c0_53 = arith.constant 0 : index
    %145 = vector.load %arg13[%c0_52, %c0_53] : memref<1x128xf32, #tpu.memory_space<vmem>>, vector<1x128xf32>
    %cst_54 = arith.constant dense<0.000000e+00> : vector<8xf32>
    %146 = vector.multi_reduction <add>, %143, %cst_54 [1] : vector<8x128xf32> to vector<8xf32>
    %147 = vector.shape_cast %146 : vector<8xf32> to vector<8x1xf32>
    %148 = arith.mulf %143, %143 : vector<8x128xf32>
    %cst_55 = arith.constant dense<0.000000e+00> : vector<8xf32>
    %149 = vector.multi_reduction <add>, %148, %cst_55 [1] : vector<8x128xf32> to vector<8xf32>
    %150 = vector.shape_cast %149 : vector<8xf32> to vector<8x1xf32>
    %cst_56 = arith.constant 3.125000e-02 : f32
    %151 = vector.broadcast %cst_56 : f32 to vector<8x1xf32>
    %152 = arith.mulf %147, %151 : vector<8x1xf32>
    %cst_57 = arith.constant 3.125000e-02 : f32
    %153 = vector.broadcast %cst_57 : f32 to vector<8x1xf32>
    %154 = arith.mulf %150, %153 : vector<8x1xf32>
    %155 = arith.mulf %152, %152 : vector<8x1xf32>
    %156 = arith.subf %154, %155 : vector<8x1xf32>
    %157 = vector.broadcast %152 : vector<8x1xf32> to vector<8x128xf32>
    %158 = arith.subf %143, %157 : vector<8x128xf32>
    %cst_58 = arith.constant 9.99999974E-6 : f32
    %159 = vector.broadcast %cst_58 : f32 to vector<8x1xf32>
    %160 = arith.addf %156, %159 : vector<8x1xf32>
    %161 = math.rsqrt %160 : vector<8x1xf32>
    %162 = vector.broadcast %161 : vector<8x1xf32> to vector<8x128xf32>
    %163 = arith.mulf %158, %162 : vector<8x128xf32>
    %164 = vector.broadcast %144 : vector<1x128xf32> to vector<8x128xf32>
    %165 = arith.mulf %163, %164 : vector<8x128xf32>
    %166 = vector.broadcast %145 : vector<1x128xf32> to vector<8x128xf32>
    %167 = arith.addf %165, %166 : vector<8x128xf32>
    %168 = arith.truncf %167 : vector<8x128xf32> to vector<8x128xbf16>
    %c0_59 = arith.constant 0 : index
    %c0_60 = arith.constant 0 : index
    %169 = vector.load %arg14[%c0_59, %c0_60] : memref<128x128xbf16, #tpu.memory_space<vmem>>, vector<128x128xbf16>
    %cst_61 = arith.constant dense<0.000000e+00> : vector<8x128xf32>
    %170 = tpu.matmul %168, %169, %cst_61 {dimension_numbers = #tpu.dot_dimension_numbers<[1], [0], [0], [1], [0, 0, 1, 1], [], []>} : vector<8x128xbf16>, vector<128x128xbf16>, vector<8x128xf32> -> vector<8x128xf32>
    %c0_62 = arith.constant 0 : index
    %c0_63 = arith.constant 0 : index
    %171 = vector.load %arg15[%c0_62, %c0_63] : memref<1x128xf32, #tpu.memory_space<vmem>>, vector<1x128xf32>
    %172 = vector.broadcast %171 : vector<1x128xf32> to vector<8x128xf32>
    %173 = arith.addf %170, %172 : vector<8x128xf32>
    %cst_64 = arith.constant 0.000000e+00 : f32
    %174 = vector.broadcast %cst_64 : f32 to vector<8x128xf32>
    %175 = arith.maximumf %173, %174 : vector<8x128xf32>
    %176 = arith.truncf %175 : vector<8x128xf32> to vector<8x128xbf16>
    %c0_65 = arith.constant 0 : index
    %c0_66 = arith.constant 0 : index
    %177 = vector.load %arg16[%c0_65, %c0_66] : memref<128x128xbf16, #tpu.memory_space<vmem>>, vector<128x128xbf16>
    %cst_67 = arith.constant dense<0.000000e+00> : vector<8x128xf32>
    %178 = tpu.matmul %176, %177, %cst_67 {dimension_numbers = #tpu.dot_dimension_numbers<[1], [0], [0], [1], [0, 0, 1, 1], [], []>} : vector<8x128xbf16>, vector<128x128xbf16>, vector<8x128xf32> -> vector<8x128xf32>
    %c0_68 = arith.constant 0 : index
    %c0_69 = arith.constant 0 : index
    %179 = vector.load %arg17[%c0_68, %c0_69] : memref<1x128xf32, #tpu.memory_space<vmem>>, vector<1x128xf32>
    %180 = vector.broadcast %179 : vector<1x128xf32> to vector<8x128xf32>
    %181 = arith.addf %178, %180 : vector<8x128xf32>
    %182 = arith.addf %143, %181 : vector<8x128xf32>
    %c0_70 = arith.constant 0 : index
    %c0_71 = arith.constant 0 : index
    %c0_72 = arith.constant 0 : index
    %183 = vector.load %arg18[%c0_70, %c0_71, %c0_72] : memref<1x8x128xf32, #tpu.memory_space<vmem>>, vector<1x8x128xf32>
    %184 = vector.shape_cast %183 : vector<1x8x128xf32> to vector<8x128xf32>
    %185 = vector.shape_cast %182 : vector<8x128xf32> to vector<1x8x128xf32>
    tpu.vector_store %arg18[%c0_70, %c0_71, %c0_72], %185 {strides = array<i32>} : memref<1x8x128xf32, #tpu.memory_space<vmem>>, vector<1x8x128xf32>,
    return
  }
  func.func @transform_0(%arg0: i32) -> (i32, i32, i32) {
    %c0_i32 = arith.constant 0 : i32
    %c0_i32_0 = arith.constant 0 : i32
    %c0_i32_1 = arith.constant 0 : i32
    return %arg0, %c0_i32, %c0_i32_0 : i32, i32, i32
  }
  func.func @transform_1(%arg0: i32) -> (i32, i32) {
    %c0_i32 = arith.constant 0 : i32
    %c0_i32_0 = arith.constant 0 : i32
    %c0_i32_1 = arith.constant 0 : i32
    return %c0_i32, %c0_i32_0 : i32, i32
  }
  func.func @transform_2(%arg0: i32) -> (i32, i32) {
    %c0_i32 = arith.constant 0 : i32
    %c0_i32_0 = arith.constant 0 : i32
    %c0_i32_1 = arith.constant 0 : i32
    return %c0_i32, %c0_i32_0 : i32, i32
  }
  func.func @transform_3(%arg0: i32) -> (i32, i32) {
    %c0_i32 = arith.constant 0 : i32
    %c0_i32_0 = arith.constant 0 : i32
    %c0_i32_1 = arith.constant 0 : i32
    return %c0_i32, %c0_i32_0 : i32, i32
  }
  func.func @transform_4(%arg0: i32) -> (i32, i32) {
    %c0_i32 = arith.constant 0 : i32
    %c0_i32_0 = arith.constant 0 : i32
    %c0_i32_1 = arith.constant 0 : i32
    return %c0_i32, %c0_i32_0 : i32, i32
  }
  func.func @transform_5(%arg0: i32) -> (i32, i32) {
    %c0_i32 = arith.constant 0 : i32
    %c0_i32_0 = arith.constant 0 : i32
    %c0_i32_1 = arith.constant 0 : i32
    return %c0_i32, %c0_i32_0 : i32, i32
  }
  func.func @transform_6(%arg0: i32) -> (i32, i32) {
    %c0_i32 = arith.constant 0 : i32
    %c0_i32_0 = arith.constant 0 : i32
    %c0_i32_1 = arith.constant 0 : i32
    return %c0_i32, %c0_i32_0 : i32, i32
  }
  func.func @transform_7(%arg0: i32) -> (i32, i32) {
    %c0_i32 = arith.constant 0 : i32
    %c0_i32_0 = arith.constant 0 : i32
    %c0_i32_1 = arith.constant 0 : i32
    return %c0_i32, %c0_i32_0 : i32, i32
  }
  func.func @transform_8(%arg0: i32) -> (i32, i32) {
    %c0_i32 = arith.constant 0 : i32
    %c0_i32_0 = arith.constant 0 : i32
    %c0_i32_1 = arith.constant 0 : i32
    return %c0_i32, %c0_i32_0 : i32, i32
  }
  func.func @transform_9(%arg0: i32) -> (i32, i32) {
    %c0_i32 = arith.constant 0 : i32
    %c0_i32_0 = arith.constant 0 : i32
    %c0_i32_1 = arith.constant 0 : i32
    return %c0_i32, %c0_i32_0 : i32, i32
  }
  func.func @transform_10(%arg0: i32) -> (i32, i32) {
    %c0_i32 = arith.constant 0 : i32
    %c0_i32_0 = arith.constant 0 : i32
    %c0_i32_1 = arith.constant 0 : i32
    return %c0_i32, %c0_i32_0 : i32, i32
  }
  func.func @transform_11(%arg0: i32) -> (i32, i32) {
    %c0_i32 = arith.constant 0 : i32
    %c0_i32_0 = arith.constant 0 : i32
    %c0_i32_1 = arith.constant 0 : i32
    return %c0_i32, %c0_i32_0 : i32, i32
  }
  func.func @transform_12(%arg0: i32) -> (i32, i32) {
    %c0_i32 = arith.constant 0 : i32
    %c0_i32_0 = arith.constant 0 : i32
    %c0_i32_1 = arith.constant 0 : i32
    return %c0_i32, %c0_i32_0 : i32, i32
  }
  func.func @transform_13(%arg0: i32) -> (i32, i32) {
    %c0_i32 = arith.constant 0 : i32
    %c0_i32_0 = arith.constant 0 : i32
    %c0_i32_1 = arith.constant 0 : i32
    return %c0_i32, %c0_i32_0 : i32, i32
  }
  func.func @transform_14(%arg0: i32) -> (i32, i32) {
    %c0_i32 = arith.constant 0 : i32
    %c0_i32_0 = arith.constant 0 : i32
    %c0_i32_1 = arith.constant 0 : i32
    return %c0_i32, %c0_i32_0 : i32, i32
  }
  func.func @transform_15(%arg0: i32) -> (i32, i32) {
    %c0_i32 = arith.constant 0 : i32
    %c0_i32_0 = arith.constant 0 : i32
    %c0_i32_1 = arith.constant 0 : i32
    return %c0_i32, %c0_i32_0 : i32, i32
  }
  func.func @transform_16(%arg0: i32) -> (i32, i32) {
    %c0_i32 = arith.constant 0 : i32
    %c0_i32_0 = arith.constant 0 : i32
    %c0_i32_1 = arith.constant 0 : i32
    return %c0_i32, %c0_i32_0 : i32, i32
  }
  func.func @transform_17(%arg0: i32) -> (i32, i32, i32) {
    %c0_i32 = arith.constant 0 : i32
    %c0_i32_0 = arith.constant 0 : i32
    %c0_i32_1 = arith.constant 0 : i32
    return %arg0, %c0_i32, %c0_i32_0 : i32, i32, i32
  }
}

</mosaic_0001>

<bundles_post_ra>
// kernel: tpu_custom_call.1
= control target key start
LH: loop header
LB: loop body
LE: loop exit
PB: predicated region body
PF: predicated region fallthrough
CT: control target
= control target key end

     0   :  { %s3510_s0 = inlined_call_operand.hbm [shape: f32[2,8,128], index: 0, kind: input, shape index: {}]   ;;  %s3511_s1 = inlined_call_operand.hbm [shape: bf16[128,128], index: 1, kind: input, shape index: {}]   ;;  %s3512_s2 = inlined_call_operand.vmem [shape: f32[1,128], index: 2, kind: input, shape index: {}]   ;;  %s3513_s3 = inlined_call_operand.hbm [shape: bf16[128,128], index: 3, kind: input, shape index: {}]   ;;  %s3514_s4 = inlined_call_operand.vmem [shape: f32[1,128], index: 4, kind: input, shape index: {}]   ;;  %s3515_s5 = inlined_call_operand.hbm [shape: bf16[128,128], index: 5, kind: input, shape index: {}]   ;;  %s3516_s6 = inlined_call_operand.vmem [shape: f32[1,128], index: 6, kind: input, shape index: {}]   ;;  %s3517_s7 = inlined_call_operand.hbm [shape: bf16[128,128], index: 7, kind: input, shape index: {}]   ;;  %s3518_s8 = inlined_call_operand.vmem [shape: f32[1,128], index: 8, kind: input, shape index: {}]   ;;  %s3519_s9 = inlined_call_operand.vmem [shape: f32[1,128], index: 9, kind: input, shape index: {}]   ;;  %s3520_s10 = inlined_call_operand.vmem [shape: f32[1,128], index: 10, kind: input, shape index: {}]   ;;  %s3521_s11 = inlined_call_operand.vmem [shape: f32[1,128], index: 11, kind: input, shape index: {}]   ;;  %s3522_s12 = inlined_call_operand.vmem [shape: f32[1,128], index: 12, kind: input, shape index: {}]   ;;  %s3523_s13 = inlined_call_operand.hbm [shape: bf16[128,128], index: 13, kind: input, shape index: {}]   ;;  %s3524_s14 = inlined_call_operand.vmem [shape: f32[1,128], index: 14, kind: input, shape index: {}]   ;;  %s3525_s15 = inlined_call_operand.hbm [shape: bf16[128,128], index: 15, kind: input, shape index: {}]   ;;  %s3526_s16 = inlined_call_operand.vmem [shape: f32[1,128], index: 16, kind: input, shape index: {}]   ;;  %s3527_s17 = inlined_call_operand.hbm [shape: f32[2,8,128], index: 17, kind: output, shape index: {}]  }
   0x1   :  { %3537 = sst [smem:[#allocation23_spill]] %s3510_s0 }
   0x2   :  { %3538 = sst [smem:[#allocation24_spill]] %s3511_s1 }
   0x3   :  { %3539 = sst [smem:[#allocation25_spill]] %s3513_s3 }
   0x4   :  { %3540 = sst [smem:[#allocation26_spill]] %s3515_s5 }
   0x5   :  { %3541 = sst [smem:[#allocation27_spill]] %s3517_s7 }
   0x6   :  { %3542 = sst [smem:[#allocation28_spill]] %s3523_s13 }
   0x7   :  { %3543 = sst [smem:[#allocation29_spill]] %s3524_s14 }
   0x8   :  { %3544 = sst [smem:[#allocation30_spill]] %s3525_s15 }
   0x9   :  { %3545 = sst [smem:[#allocation31_spill]] %s3526_s16 }
   0xa   :  { %3546 = sst [smem:[#allocation32_spill]] %s3527_s17 }
   0xb   :  { %22 = vsyncpa [#allocation3], 0 }
   0xc   :  { %24 = vsyncpa [#allocation3 + $0x1], 0 }
   0xd   :  { %25 = vsyncpa [#allocation6], 0 }
   0xe   :  { %26 = vsyncpa [#allocation9], 0 }
   0xf   :  { %27 = vsyncpa [#allocation12], 0 }
  0x10   :  { %28 = vsyncpa [#allocation4], 0 }
  0x11   :  { %30 = vsyncpa [#allocation4 + $0x1], 0  ;;  %s3060_s24 = smov 0   ;;  %s3062_s25 = smov 0  }
  0x12   :  { %s3064_s26 = smov 0   ;;  %s3066_s27 = smov 0  }
  0x13 LB: > { %3547 = sst [smem:[#allocation20_spill]] %s2949_s26  ;;  %s2955_s28 = smov [#allocation5]   ;;  %s2953_s27 = sphi %s3066_s27, %s3579_s27   ;;  %s2949_s26 = sphi %s3064_s26, %s3581_s26   ;;  %s2945_s25 = sphi %s3062_s25, %s3583_s25   ;;  %s2941_s24 = sphi %s3060_s24, %s3582_s24  }
  0x14   : > { %s441_s29 = sshll.u32 %s2955_s28, 4  ;;  %s3081_s0 = sadd.s32 4294967295, %s2953_s27   ;;  %s442_s29 = int_to_ptr.vmem [resolvable:$true] %s441_s29 }
  0x15   : > { %p2193_p0 = scmp.ge.s32.totalorder %s2953_s27, 1  ;;  %p3530_p1 = scmp.eq.s32.totalorder %s3081_s0, 0 }
  0x16   : > { %p429_p2 = scmp.lt.s32.totalorder %s2953_s27, 3  ;;  %s2956_s18 = smov [#allocation8]  }
  0x17   : > { %s473_s19 = sshll.u32 %s2956_s18, 4  ;;  %s2957_s20 = smov [#allocation11]   ;;  %s3099_s19 = int_to_ptr.vmem [resolvable:$true] %s473_s19 }
  0x18   : > { %p3086_p3 = pnand %p2193_p0, %p429_p2  ;;  %s517_s21 = sshll.u32 %s2957_s20, 4  ;;  %s3101_s21 = int_to_ptr.vmem [resolvable:$true] %s517_s21 }
  0x19   : > { %s2704_s23 = scalar_lea.vmem %s442_s29, 1024  ;;  %p2712_p11 = scmp.lt.s32.totalorder %s442_s29, %s442_s29 }
  0x1a   : > { %s3548_s30 = scalar_select %p3086_p3, 1, 0 }
  0x1b   : > { %p2547_p5 = pneg %p3086_p3  ;;  %p2705_p8 = scmp.ne.s32.totalorder %s442_s29, %s2704_s23 }
  0x1c   : > { %p2713_p12 = scmp.lt.s32.totalorder %s2704_s23, %s2704_s23 }
  0x1d   : > { %p3095_p6 = pnand %p2547_p5, %p3530_p1 }
  0x1e   : > { %p2714_p13 = por %p2713_p12, %p2712_p11 }
  0x1f   : > { %p3105_p7 = pneg %p3095_p6 }
  0x21   : > { %p2707_p9 = pnand %p2705_p8, %p3105_p7 }
  0x23   : > { %p2708_p10 = pneg %p2707_p9 }
  0x25   : > { %p2715_p0 = pnand %p2714_p13, %p2708_p10 }
  0x27   : > { %2718 = shalt.err (!%p2715_p0)
}
  0x28   : > { %s2958_s28 = smov 64   ;;  %s2959_s18 = smov 4  }
  0x29   : > { %s3551_s16 = sld [smem:[#allocation24_spill]]  ;;  %s2730_s14 = scalar_lea.vmem %s3099_s19, 1024 }
  0x2a   : > { %p2731_p2 = scmp.ne.s32.totalorder %s3099_s19, %s2730_s14  ;;  %p2738_p9 = scmp.lt.s32.totalorder %s3099_s19, %s3099_s19 }
  0x2b   : > { %p2739_p10 = scmp.lt.s32.totalorder %s2730_s14, %s2730_s14 }
  0x2c   : > { %p2733_p5 = pnand %p2731_p2, %p3105_p7 }
  0x2d   : > { %p2740_p11 = por %p2739_p10, %p2738_p9 }
  0x2e   : > { %p2734_p8 = pneg %p2733_p5 }
  0x2f   : > { %2550 = dma.hbm_to_vmem [thread:$0]  (!%p3095_p6), %s3551_s16, 1024, %s442_s29, [#allocation6], %s2958_s28, %s2958_s28, %s2959_s18  }
  0x30   : > { %p2741_p12 = pnand %p2740_p11, %p2734_p8 }
  0x32   : > { %2744 = shalt.err (!%p2741_p12)
}
  0x33   : > { %s3552_s5 = sld [smem:[#allocation26_spill]]  ;;  %s2756_s16 = scalar_lea.vmem %s3101_s21, 1024 }
  0x34   : > { %p2757_p13 = scmp.ne.s32.totalorder %s3101_s21, %s2756_s16  ;;  %p2764_p5 = scmp.lt.s32.totalorder %s3101_s21, %s3101_s21 }
  0x35   : > { %p2765_p8 = scmp.lt.s32.totalorder %s2756_s16, %s2756_s16 }
  0x36   : > { %p2759_p0 = pnand %p2757_p13, %p3105_p7 }
  0x37   : > { %p2766_p9 = por %p2765_p8, %p2764_p5 }
  0x38   : > { %p2760_p2 = pneg %p2759_p0 }
  0x39   : > { %2556 = dma.hbm_to_vmem [thread:$0]  (!%p3095_p6), %s3552_s5, 1024, %s3099_s19, [#allocation9], %s2958_s28, %s2958_s28, %s2959_s18  }
  0x3a   : > { %p2767_p10 = pnand %p2766_p9, %p2760_p2 }
  0x3c   : > { %2770 = shalt.err (!%p2767_p10)
}
  0x3d   : > { %s3553_s13 = sld [smem:[#allocation28_spill]]  ;;  %s2960_s19 = smov [#allocation7]  }
  0x3e   : > { %s457_s20 = sshll.u32 %s2960_s19, 4  ;;  %s2961_s23 = smov [#allocation10]   ;;  %s458_s20 = int_to_ptr.vmem [resolvable:$true] %s457_s20 }
  0x3f   : > { %s489_s17 = sshll.u32 %s2961_s23, 4  ;;  %s2782_s16 = scalar_lea.vmem %s458_s20, 1024  ;;  %s490_s17 = int_to_ptr.vmem [resolvable:$true] %s489_s17 }
  0x40   : > { %p2783_p11 = scmp.ne.s32.totalorder %s458_s20, %s2782_s16  ;;  %p2790_p0 = scmp.lt.s32.totalorder %s458_s20, %s458_s20 }
  0x41   : > { %p2791_p2 = scmp.lt.s32.totalorder %s2782_s16, %s2782_s16 }
  0x42   : > { %p2785_p12 = pnand %p2783_p11, %p3105_p7 }
  0x43   : > { %2562 = dma.hbm_to_vmem [thread:$0]  (!%p3095_p6), %s3553_s13, 1024, %s3101_s21, [#allocation12], %s2958_s28, %s2958_s28, %s2959_s18  }
  0x44   : > { %p2786_p13 = pneg %p2785_p12  ;;  %p2792_p5 = por %p2791_p2, %p2790_p0 }
  0x46   : > { %p2793_p8 = pnand %p2792_p5, %p2786_p13 }
  0x48   : > { %2796 = shalt.err (!%p2793_p8)
}
  0x49   : > { %s3554_s3 = sld [smem:[#allocation25_spill]]  ;;  %s2808_s29 = scalar_lea.vmem %s490_s17, 1024 }
  0x4a   : > { %p2809_p9 = scmp.ne.s32.totalorder %s490_s17, %s2808_s29  ;;  %p2816_p12 = scmp.lt.s32.totalorder %s490_s17, %s490_s17 }
  0x4b   : > { %p2817_p0 = scmp.lt.s32.totalorder %s2808_s29, %s2808_s29 }
  0x4c   : > { %p2811_p10 = pnand %p2809_p9, %p3105_p7 }
  0x4d   : > { %p2818_p13 = por %p2817_p0, %p2816_p12 }
  0x4e   : > { %p2812_p11 = pneg %p2811_p10 }
  0x4f   : > { %2553 = dma.hbm_to_vmem [thread:$0]  (!%p3095_p6), %s3554_s3, 1024, %s458_s20, [#allocation6], %s2958_s28, %s2958_s28, %s2959_s18  }
  0x50   : > { %p2819_p2 = pnand %p2818_p13, %p2812_p11 }
  0x52   : > { %2822 = shalt.err (!%p2819_p2)
}
  0x53   : > { %s3555_s7 = sld [smem:[#allocation27_spill]]  ;;  %s2962_s20 = smov [#allocation13]  }
  0x54   : > { %s533_s16 = sshll.u32 %s2962_s20, 4  ;;  %s534_s16 = int_to_ptr.vmem [resolvable:$true] %s533_s16 }
  0x55   : > { %s2834_s21 = scalar_lea.vmem %s534_s16, 1024  ;;  %p2842_p10 = scmp.lt.s32.totalorder %s534_s16, %s534_s16 }
  0x56   : > { %p2835_p5 = scmp.ne.s32.totalorder %s534_s16, %s2834_s21  ;;  %p2843_p11 = scmp.lt.s32.totalorder %s2834_s21, %s2834_s21 }
  0x58   : > { %p2837_p8 = pnand %p2835_p5, %p3105_p7  ;;  %p2844_p12 = por %p2843_p11, %p2842_p10 }
  0x59   : > { %2559 = dma.hbm_to_vmem [thread:$0]  (!%p3095_p6), %s3555_s7, 1024, %s490_s17, [#allocation9], %s2958_s28, %s2958_s28, %s2959_s18  }
  0x5a   : > { %p2838_p9 = pneg %p2837_p8 }
  0x5c   : > { %p2845_p0 = pnand %p2844_p12, %p2838_p9 }
  0x5e   : > { %2848 = shalt.err (!%p2845_p0)
}
  0x5f   : > { %s3556_s15 = sld [smem:[#allocation30_spill]]  ;;  %s2192_s1 = sadd.s32 4294967294, %s2953_s27  }
  0x60   : > { %s3181_s22 = sadd.s32 1, %s2953_s27   ;;  %s43_s19 = sadd.s32 1, %s2949_s26 }
  0x61   : > { %3557 = sst [smem:[#allocation21_spill]] %s3181_s22  ;;  %s40_s29 = ssub.s32 %s2953_s27, %s3181_s22 }
  0x62   : > { %p41_p7 = scmp.eq.s32.totalorder %s40_s29, 0  ;;  %p50_p13 = scmp.ne.s32.totalorder %s2949_s26, %s2945_s25 }
  0x63   : > { %p51_p2 = scmp.eq.s32.totalorder %s2953_s27, 0  ;;  %p56_p5 = scmp.ne.s32.totalorder %s2945_s25, %s2941_s24 }
  0x64   : > { %s3192_s23 = scalar_select %p41_p7, %s2949_s26, %s43_s19  }
  0x65   : > { %2565 = dma.hbm_to_vmem [thread:$0]  (!%p3095_p6), %s3556_s15, 1024, %s534_s16, [#allocation12], %s2958_s28, %s2958_s28, %s2959_s18  }
  0x66   : > { %3558 = sst [smem:[#allocation22_spill]] %s3192_s23  ;;  %p3194_p8 = por %p51_p2, %p50_p13 }
  0x67   : > { %p3200_p6 = por %p3530_p1, %p56_p5  ;;  %p416_p9 = scmp.eq.s32.totalorder %s3081_s0, 1 }
  0x68   : > { %p422_p10 = scmp.eq.s32.totalorder %s2192_s1, 1  ;;  %p2580_p11 = scmp.lt.s32.totalorder %s2953_s27, 2 }
  0x69   : > { %s3560_s28 = scalar_select %p3200_p6, 1, 0 }
  0x6a   : > { %s550_s18 = sand.u32 1, %s2949_s26   ;;  %p3207_p12 = por %p416_p9, %p50_p13 }
  0x6b   : > { %p3211_p0 = por %p422_p10, %p56_p5  ;;  %s2201_s14 = sshll.u32 %s550_s18, 3 }
  0x6c   : > { %s3561_s16 = scalar_select %p3207_p12, 1, 0 }
  0x6d   : > { %s3562_s21 = scalar_select %p3211_p0, 1, 0 }
  0x6e   : > { %s2202_s17 = sshll.u32 %s2953_s27, 7  ;;  %s3563_s3 = sld [smem:[#allocation23_spill]] }
  0x6f   : > { %s554_s1 = scalar_lea.vmem [#allocation2], %s2201_s14  ;;  %p3223_p7 = pnand %p2580_p11, %p3194_p8 }
  0x70   : > { %s561_s7 = sshll.u32 %s554_s1, 4  ;;  %s551_s15 = scalar_lea.sflag [#allocation3], %s550_s18  ;;  %s562_s7 = int_to_ptr.vmem [resolvable:$true] %s561_s7 }
  0x71   : > { %p2851_p2 = pneg %p3223_p7 }
  0x74   : > { %s3219_s5 = scalar_lea.hbm %s3563_s3, %s2202_s17  ;;  %s2854_s19 = scalar_lea.hbm %s3563_s3, 256 }
  0x75   : > { %s2849_s23 = scalar_lea.hbm %s3219_s5, 128  ;;  %p2855_p10 = scmp.lt.s32.totalorder %s3219_s5, %s3563_s3 }
  0x76   : > { %p2850_p13 = scmp.ne.s32.totalorder %s3219_s5, %s2849_s23  ;;  %p2856_p8 = scmp.lt.s32.totalorder %s2854_s19, %s2849_s23 }
  0x78   : > { %p2852_p5 = pnand %p2851_p2, %p2850_p13  ;;  %p2857_p11 = por %p2856_p8, %p2855_p10 }
  0x7a   : > { %p2853_p9 = pneg %p2852_p5 }
  0x7c   : > { %p2858_p4 = pnand %p2857_p11, %p2853_p9 }
  0x7e   : > { %2861 = shalt.err (!%p2858_p4)
}
  0x7f   : > { %s2862_s20 = scalar_lea.vmem %s562_s7, 128  ;;  %s2963_s18 = smov [#allocation2]  }
  0x80   : > { %p2863_p1 = scmp.ne.s32.totalorder %s562_s7, %s2862_s20  ;;  %s2867_s26 = sshll.u32 %s2963_s18, 4  ;;  %s2868_s26 = int_to_ptr.vmem [resolvable:$false] %s2867_s26 }
  0x81   : > { %s2869_s22 = scalar_lea.vmem %s2868_s26, 256  ;;  %p2870_p13 = scmp.lt.s32.totalorder %s562_s7, %s2868_s26 }
  0x82   : > { %p2865_p0 = pnand %p2863_p1, %p2851_p2  ;;  %p2871_p5 = scmp.lt.s32.totalorder %s2869_s22, %s2862_s20 }
  0x84   : > { %p2866_p12 = pneg %p2865_p0  ;;  %p2872_p6 = por %p2871_p5, %p2870_p13 }
  0x86   : > { %p2873_p3 = pnand %p2872_p6, %p2866_p12 }
  0x88   : > { %2876 = shalt.err (!%p2873_p3)
}
  0x89   : > { %2569 = dma.hbm_to_vmem [thread:$0]  (!%p3223_p7), %s3219_s5, 128, %s562_s7, %s551_s15  }
  0x8a   : > { %p3565_p9 = scmp.ne.s32.totalorder %s3548_s30, 0 }
  0x8b   : > { %s3244_s23 = sand.u32 (!%p3565_p9), 1, %s2945_s25   ;;  %p3566_p1 = scmp.ne.s32.totalorder (!%p3565_p9), %s3560_s28, 0 }
  0x8c   : > { %570 = sbr.rel (%p3565_p9) target bundleno = 3897 (0xf39), region = 88  ;;  %s2204_s17 = sshll.u32 (!%p3565_p9), %s3244_s23, 3 }
  0x8d   : > { %s573_s26 = scalar_lea.sflag (!%p3565_p9), [#allocation3], %s3244_s23  ;;  %s576_s22 = scalar_lea.vmem (!%p3565_p9), [#allocation2], %s2204_s17 }
  0x91   : > { %2920 = dma.done.wait (%p3566_p1), %s573_s26, 128  }
  0x92   : > { %2922 = vsyncadd (%p3566_p1), %s573_s26, 4294967168  ;;  %p3567_p3 = scmp.eq.s32.totalorder %s3081_s0, 0 }
  0x94   : > { %2924 = dma.done.wait (%p3567_p3), [#allocation6], 2048   ;;  %p3568_p4 = pmov %p3567_p3 }
  0x95   : > { %p3569_p6 = pmov %p3567_p3 }
  0x96   : > { %2926 = vsyncadd (%p3568_p4), [#allocation6], 4294965248 }
  0x97   : > { %2928 = dma.done.wait (%p3569_p6), [#allocation9], 2048   ;;  %p3570_p12 = pmov %p3567_p3 }
  0x98   : > { %p3571_p0 = pmov %p3567_p3 }
  0x99   : > { %2930 = vsyncadd (%p3570_p12), [#allocation9], 4294965248 }
  0x9a   : > { %2932 = dma.done.wait (%p3571_p0), [#allocation12], 2048   ;;  %p3572_p7 = pmov %p3571_p0 }
  0x9b   : > { %v2964_v0 = vmov 0.0   ;;  %v3268_v1 = vld [vmem:[%s576_s22] sm:$0xff]  ;;  %v2637_v7 = vld [vmem:[#allocation5 + $0x28] sm:$0xff]   ;;  %v2639_v9 = vld [vmem:[#allocation5 + $0x20] sm:$0xff]   ;;  %vm2965_vm0 = vmmov 0   ;;  %s2966_s29 = smov 120  }
  0x9c   : > { %2934 = vsyncadd (%p3572_p7), [#allocation12], 4294965248  ;;  %2347 = vmatprep.subr.bf16.mxu0 %v2964_v0  ;;  %2367 = vmatprep.subr.bf16.mxu1 %v2964_v0  ;;  %v657_v2 = vmul.f32 %v3268_v1, %v3268_v1  ;;  %v2633_v3 = vld [vmem:[#allocation5 + $0x38] sm:$0xff]   ;;  %v2635_v5 = vld [vmem:[#allocation5 + $0x30] sm:$0xff]   ;;  %vm1058_vm1 = vcmask 1043456   ;;  %vm1054_vm2 = vcmask 64512  }
  0x9d   : > { %655 = vadd.xlane.f32.xlu0 %v3268_v1  ;;  %v2634_v4 = vld [vmem:[#allocation7 + $0x38] sm:$0xff]   ;;  %2348 = vmatpush3.bf16.msra.mxu0 %v2633_v3  ;;  %v2636_v6 = vld [vmem:[#allocation7 + $0x30] sm:$0xff]   ;;  %v2638_v8 = vld [vmem:[#allocation7 + $0x28] sm:$0xff]   ;;  %s2967_s18 = smov 112   ;;  %s2968_s26 = smov 104  }
  0x9e   : > { %2368 = vmatpush3.bf16.msra.mxu1 %v2634_v4  ;;  %2349 = vmatprep.subr.bf16.mxu0 %v2964_v0  ;;  %v2640_v10 = vld [vmem:[#allocation7 + $0x20] sm:$0xff]   ;;  %v2641_v11 = vld [vmem:[#allocation5 + $0x18] sm:$0xff]   ;;  %v2643_v13 = vld [vmem:[#allocation5 + $0x10] sm:$0xff]   ;;  %s3573_s19 = sld [smem:[#allocation29_spill]]  ;;  %p3576_p10 = scmp.ne.s32.totalorder %s3561_s16, 0 }
  0x9f   : > { %2369 = vmatprep.subr.bf16.mxu1 %v2964_v0  ;;  %2363 = vmatprep.mubr.msk.bf16.mxu0 %vm2965_vm0, %v2964_v0  ;;  %v2642_v12 = vld [vmem:[#allocation7 + $0x18] sm:$0xff]   ;;  %v2644_v14 = vld [vmem:[#allocation7 + $0x10] sm:$0xff]   ;;  %v2645_v15 = vld [vmem:[#allocation5 + $0x8] sm:$0xff]   ;;  %s3574_s20 = sld [smem:[#allocation31_spill]]  ;;  %s2969_s30 = smov [#allocation14]  }
  0xa0   : > { %2383 = vmatprep.mubr.msk.bf16.mxu1 %vm2965_vm0, %v2964_v0  ;;  %v2646_v16 = vld [vmem:[#allocation7 + $0x8] sm:$0xff]   ;;  %v2647_v17 = vld [vmem:[#allocation5] sm:$0xff]   ;;  %v2212_v28 = vld [vmem:[%s3519_s9] ss:$0 sm:$0xff]  ;;  %s3575_s13 = sld [smem:[#allocation32_spill]]  ;;  %s2881_s28 = sshll.u32 %s2969_s30, 4  ;;  %s2882_s28 = int_to_ptr.vmem [resolvable:$false] %s2881_s28 }
  0xa1   : > { %658 = vadd.xlane.f32.xlu0 %v657_v2  ;;  %2350 = vmatpush3.bf16.msra.mxu0 %v2635_v5  ;;  %v2648_v18 = vld [vmem:[#allocation7] sm:$0xff]   ;;  %v2213_v30 = vld [vmem:[%s3520_s10] ss:$0 sm:$0xff]  ;;  %v2649_v33 = vld [vmem:[#allocation8 + $0x38] sm:$0xff]  }
  0xa2   : > { %2370 = vmatpush3.bf16.msra.mxu1 %v2636_v6  ;;  %2351 = vmatprep.subr.bf16.mxu0 %v2964_v0  ;;  %v2650_v35 = vld [vmem:[#allocation8 + $0x30] sm:$0xff]   ;;  %v2651_v36 = vld [vmem:[#allocation8 + $0x28] sm:$0xff]   ;;  %v2652_v37 = vld [vmem:[#allocation8 + $0x20] sm:$0xff]  }
  0xa3   : > { %2371 = vmatprep.subr.bf16.mxu1 %v2964_v0  ;;  %v2653_v38 = vld [vmem:[#allocation8 + $0x18] sm:$0xff]   ;;  %v2654_v39 = vld [vmem:[#allocation8 + $0x10] sm:$0xff]   ;;  %v2655_v40 = vld [vmem:[#allocation8 + $0x8] sm:$0xff]  }
  0xa4   : > { %v2656_v41 = vld [vmem:[#allocation8] sm:$0xff]   ;;  %v2223_v42 = vld [vmem:[%s3514_s4] ss:$0 sm:$0xff] }
  0xa5   : > { %2352 = vmatpush3.bf16.msra.mxu0 %v2637_v7  ;;  %v2232_v56 = vld [vmem:[%s3516_s6] ss:$0 sm:$0xff] }
  0xa6   : > { %2372 = vmatpush3.bf16.msra.mxu1 %v2638_v8  ;;  %2353 = vmatprep.subr.bf16.mxu0 %v2964_v0  ;;  %v2214_v57 = vld [vmem:[%s3512_s2] ss:$0 sm:$0xff] }
  0xa7   : > { %2373 = vmatprep.subr.bf16.mxu1 %v2964_v0 }
  0xa9   : > { %2354 = vmatpush3.bf16.msra.mxu0 %v2639_v9 }
  0xaa   : > { %2374 = vmatpush3.bf16.msra.mxu1 %v2640_v10  ;;  %2355 = vmatprep.subr.bf16.mxu0 %v2964_v0 }
  0xab   : > { %2375 = vmatprep.subr.bf16.mxu1 %v2964_v0 }
  0xad   : > { %2356 = vmatpush3.bf16.msra.mxu0 %v2641_v11 }
  0xae   : > { %2376 = vmatpush3.bf16.msra.mxu1 %v2642_v12  ;;  %2357 = vmatprep.subr.bf16.mxu0 %v2964_v0 }
  0xaf   : > { %2377 = vmatprep.subr.bf16.mxu1 %v2964_v0 }
  0xb1   : > { %2358 = vmatpush3.bf16.msra.mxu0 %v2643_v13 }
  0xb2   : > { %2378 = vmatpush3.bf16.msra.mxu1 %v2644_v14  ;;  %2359 = vmatprep.subr.bf16.mxu0 %v2964_v0 }
  0xb3   : > { %2379 = vmatprep.subr.bf16.mxu1 %v2964_v0 }
  0xb5   : > { %2360 = vmatpush3.bf16.msra.mxu0 %v2645_v15 }
  0xb6   : > { %2380 = vmatpush3.bf16.msra.mxu1 %v2646_v16  ;;  %2361 = vmatprep.subr.bf16.mxu0 %v2964_v0 }
  0xb7   : > { %2381 = vmatprep.subr.bf16.mxu1 %v2964_v0 }
  0xb9   : > { %2362 = vmatpush3.bf16.msra.mxu0 %v2647_v17 }
  0xba   : > { %2382 = vmatpush3.bf16.msra.mxu1 %v2648_v18  ;;  %2387 = vmatprep.subr.bf16.mxu0 %v2964_v0 }
  0xbb   : > { %2407 = vmatprep.subr.bf16.mxu1 %v2964_v0 }
 0x126   : > { %v656_v19 = vpop.xlane.xlu0 %655 }
 0x127   : > { %v660_v20 = vmul.f32 0.03125, %v656_v19 }
 0x129   : > { %v662_v22 = vmul.f32 %v660_v20, %v660_v20  ;;  %v664_v26 = vsub.f32 %v3268_v1, %v660_v20 }
 0x12a   : > { %v659_v21 = vpop.xlane.xlu0 %658 }
 0x12b   : > { %v661_v23 = vmul.f32 0.03125, %v659_v21 }
 0x12d   : > { %v663_v24 = vsub.f32 %v661_v23, %v662_v22 }
 0x12f   : > { %v665_v25 = vadd.f32 1e-05, %v663_v24 }
 0x131   : > { %2673 = vrsqrt.f32 %v665_v25 }
 0x13e   : > { %v2674_v27 = vpop.eup %2673 }
 0x13f   : > { %v667_v29 = vmul.f32 %v2674_v27, %v664_v26 }
 0x141   : > { %v674_v31 = vmul.f32 %v2212_v28, %v667_v29 }
 0x143   : > { %v681_v32 = vadd.f32 %v2213_v30, %v674_v31 }
 0x145   : > { %v682_v34 = vpack.c.bf16 %v681_v32, %v681_v32 }
 0x147   : > { %2364 = vmatmul.mubr.bf16.vlgmr.msra.gmra.mxu0 %v682_v34  ;;  %2384 = vmatmul.mubr.bf16.vlgmr.msra.gmra.mxu1 %v682_v34 }
 0x148   : > { %2388 = vmatpush3.bf16.msra.mxu0 %v2649_v33  ;;  %2403 = vmatprep.mubr.msk.bf16.mxu0 %vm2965_vm0, %v2964_v0 }
 0x149   : > { %2389 = vmatprep.subr.bf16.mxu0 %v2964_v0  ;;  %2409 = vmatprep.mubr.msk.bf16.mxu1 %vm2965_vm0, %v2964_v0 }
 0x14c   : > { %2390 = vmatpush3.bf16.msra.mxu0 %v2650_v35 }
 0x14d   : > { %2391 = vmatprep.subr.bf16.mxu0 %v2964_v0 }
 0x150   : > { %2392 = vmatpush3.bf16.msra.mxu0 %v2651_v36 }
 0x151   : > { %2393 = vmatprep.subr.bf16.mxu0 %v2964_v0 }
 0x154   : > { %2394 = vmatpush3.bf16.msra.mxu0 %v2652_v37 }
 0x155   : > { %2395 = vmatprep.subr.bf16.mxu0 %v2964_v0 }
 0x158   : > { %2396 = vmatpush3.bf16.msra.mxu0 %v2653_v38 }
 0x159   : > { %2397 = vmatprep.subr.bf16.mxu0 %v2964_v0 }
 0x15c   : > { %2398 = vmatpush3.bf16.msra.mxu0 %v2654_v39 }
 0x15d   : > { %2399 = vmatprep.subr.bf16.mxu0 %v2964_v0 }
 0x160   : > { %2400 = vmatpush3.bf16.msra.mxu0 %v2655_v40 }
 0x161   : > { %2401 = vmatprep.subr.bf16.mxu0 %v2964_v0 }
 0x164   : > { %2402 = vmatpush3.bf16.msra.mxu0 %v2656_v41 }
 0x165   : > { %2431 = vmatprep.subr.bf16.mxu0 %v2964_v0 }
 0x167   : > { %2404 = vmatmul.mubr.bf16.vlgmr.msra.gmra.mxu0 %v682_v34 }
 0x168   : > { %2433 = vmatprep.mubr.msk.bf16.mxu0 %vm2965_vm0, %v2964_v0 }
 0x207   : > { %v788_v43 = vpop.f32.mrf.mxu0  ;;  %v899_v44 = vpop.f32.mrf.mxu1 }
 0x208   : > { %v3317_v45 = vadd.f32 %v2223_v42, %v899_v44  ;;  %v789_v60 = vadd.f32 %v2214_v57, %v788_v43  ;;  %v1016_v42 = vld [vmem:[#allocation10] sm:$0xf] }
 0x209   : > { %v2365_v46 = vpop.f32.mrf.mxu0  ;;  %v2385_v47 = vpop.f32.mrf.mxu1 }
 0x20a   : > { %1163 = vrot.lane.b32.xlu0 %v3317_v45, %s2966_s29  ;;  %1021 = vxpose.xlu1.b32.start.end [1/1] (short) (narrow) %v3317_v45, 8  ;;  %v3331_v2 = vpack.c.bf16 %v789_v60, %v789_v60  ;;  %v1360_v46 = vsel %vm1058_vm1, %v1016_v42, 0 }
 0x20b   : > { %v791_v48 = vpop.f32.mrf.mxu0  ;;  %v902_v49 = vpop.f32.mrf.mxu1 }
 0x20c   : > { %v1017_v48 = vld [vmem:[#allocation10 + $0x4] sm:$0xf] }
 0x20d   : > { %v2366_v50 = vpop.f32.mrf.mxu0  ;;  %v2386_v51 = vpop.f32.mrf.mxu1  ;;  %v1314_v49 = vsel %vm1058_vm1, %v1017_v48, 0 }
 0x20e   : > { %2432 = vmatpush3.bf16.msra.mxu0 %v1314_v49 }
 0x20f   : > { %2443 = vmatprep.subr.bf16.mxu0 %v2964_v0 }
 0x227   : > { %v1010_v52 = vpop.f32.mrf.mxu0 }
 0x228   : > { %v1011_v58 = vadd.f32 %v2232_v56, %v1010_v52 }
 0x229   : > { %v2405_v53 = vpop.f32.mrf.mxu0 }
 0x22a   : > { %v3328_v62 = vpack.c.bf16 %v1011_v58, %v1011_v58 }
 0x22b   : > { %v1013_v54 = vpop.f32.mrf.mxu0 }
 0x22c   : > { %v1119_v3 = vsel %vm1058_vm1, %v3328_v62, 0 }
 0x22d   : > { %v2406_v55 = vpop.f32.mrf.mxu0 }
 0x27c   : > { %v1164_v9 = vpop.permute.xlu0 %1163 }
 0x286   : > { %v1037_v59 = vpop.trf.xlu1 }
 0x287   : > { %v1053_v61 = vpack.c.bf16 %v1037_v59, %v1037_v59 }
 0x289   : > { %v1060_v63 = vsel %vm1058_vm1, %v1053_v61, 0 }
 0x28a   : > { %2408 = vmatpush3.bf16.msra.mxu1 %v1060_v63 }
 0x28b   : > { %2413 = vmatprep.subr.bf16.mxu1 %v2964_v0 }
 0x28d   : > { %2410 = vmatmul.mubr.msk.bf16.vlgmr.msra.gmra.mxu1 %vm1054_vm2, %v3331_v2 }
 0x28e   : > { %2414 = vmatpush3.bf16.msra.mxu1 %v1119_v3  ;;  %2415 = vmatprep.mubr.msk.bf16.mxu1 %vm2965_vm0, %v2964_v0 }
 0x28f   : > { %2419 = vmatprep.subr.bf16.mxu1 %v2964_v0 }
 0x34d   : > { %v1096_v4 = vpop.f32.mrf.mxu1 }
 0x34e   : > { %v1102_v5 = vsel %vm1054_vm2, %v1096_v4, -inf }
 0x34f   : > { %1103 = vmax.xlane.f32.xlu1 %v1102_v5  ;;  %v2411_v6 = vpop.f32.mrf.mxu1 }
 0x351   : > { %v1099_v7 = vpop.f32.mrf.mxu1 }
 0x353   : > { %v2412_v8 = vpop.f32.mrf.mxu1 }
 0x360   : > { %1200 = vrot.lane.b32.xlu1 %v3331_v2, %s2966_s29 }
 0x389   : > { %1166 = vxpose.xlu1.b32.start.end [1/1] (short) (narrow) %v1164_v9, 8 }
 0x3d8   : > { %v1104_v10 = vpop.xlane.xlu1 %1103 }
 0x3d9   : > { %v1105_v11 = vsub.f32 %v1096_v4, %v1104_v10 }
 0x3db   : > { %v1106_v12 = vmul.f32 1.442695, %v1105_v11 }
 0x3dc   : > { %v1201_v16 = vpop.permute.xlu1 %1200 }
 0x3dd   : > { %2675 = vpow2.f32 %v1106_v12 }
 0x3ea   : > { %v2676_v13 = vpop.eup %2675 }
 0x3eb   : > { %v1108_v14 = vsel %vm1054_vm2, %v2676_v13, 0.0 }
 0x3ec   : > { %1109 = vadd.xlane.f32.xlu0 %v1108_v14 }
 0x405   : > { %v1182_v17 = vpop.trf.xlu1 }
 0x406   : > { %v1198_v18 = vpack.c.bf16 %v1182_v17, %v1182_v17 }
 0x408   : > { %v1206_v22 = vsel %vm1058_vm1, %v1198_v18, 0 }
 0x475   : > { %v1110_v15 = vpop.xlane.xlu0 %1109 }
 0x476   : > { %2677 = vrcp.f32 %v1110_v15 }
 0x483   : > { %v2678_v19 = vpop.eup %2677 }
 0x484   : > { %v1112_v20 = vmul.f32 %v2678_v19, %v2676_v13 }
 0x486   : > { %v1113_v21 = vpack.c.bf16 %v1112_v20, %v1112_v20 }
 0x488   : > { %2416 = vmatmul.mubr.msk.bf16.vlgmr.msra.gmra.mxu1 %vm1054_vm2, %v1113_v21 }
 0x489   : > { %2420 = vmatpush3.bf16.msra.mxu1 %v1206_v22  ;;  %2421 = vmatprep.mubr.msk.bf16.mxu1 %vm2965_vm0, %v2964_v0 }
 0x48a   : > { %2425 = vmatprep.subr.bf16.mxu1 %v2964_v0 }
 0x490   : > { %2422 = vmatmul.mubr.msk.bf16.vlgmr.msra.gmra.mxu1 %vm1054_vm2, %v1201_v16 }
 0x491   : > { %2427 = vmatprep.mubr.msk.bf16.mxu1 %vm2965_vm0, %v2964_v0 }
 0x548   : > { %v1155_v23 = vpop.f32.mrf.mxu1 }
 0x549   : > { %v1161_v47 = vpack.c.bf16 %v1155_v23, %v1155_v23 }
 0x54a   : > { %v2417_v24 = vpop.f32.mrf.mxu1 }
 0x54c   : > { %v1158_v25 = vpop.f32.mrf.mxu1 }
 0x54e   : > { %v2418_v26 = vpop.f32.mrf.mxu1 }
 0x550   : > { %v1242_v27 = vpop.f32.mrf.mxu1 }
 0x551   : > { %v1248_v28 = vsel %vm1054_vm2, %v1242_v27, -inf }
 0x552   : > { %1249 = vmax.xlane.f32.xlu0 %v1248_v28  ;;  %v2423_v29 = vpop.f32.mrf.mxu1 }
 0x554   : > { %v1245_v30 = vpop.f32.mrf.mxu1 }
 0x556   : > { %v2424_v31 = vpop.f32.mrf.mxu1 }
 0x5db   : > { %v1250_v32 = vpop.xlane.xlu0 %1249 }
 0x5dc   : > { %v1251_v33 = vsub.f32 %v1242_v27, %v1250_v32 }
 0x5de   : > { %v1252_v34 = vmul.f32 1.442695, %v1251_v33 }
 0x5e0   : > { %2679 = vpow2.f32 %v1252_v34 }
 0x5ed   : > { %v2680_v35 = vpop.eup %2679 }
 0x5ee   : > { %v1254_v36 = vsel %vm1054_vm2, %v2680_v35, 0.0 }
 0x5ef   : > { %1255 = vadd.xlane.f32.xlu0 %v1254_v36 }
 0x605   : > { %1261 = vrot.lane.b32.xlu0 %v3328_v62, %s2966_s29  ;;  %s2883_s29 = scalar_lea.vmem %s2882_s28, 256 }
 0x609   : > { %1402 = vrot.lane.b32.xlu0 %v3317_v45, %s2967_s18 }
 0x60d   : > { %1438 = vrot.lane.b32.xlu0 %v3331_v2, %s2967_s18 }
 0x678   : > { %v1256_v37 = vpop.xlane.xlu0 %1255 }
 0x679   : > { %2681 = vrcp.f32 %v1256_v37 }
 0x67c   : > { %v1262_v38 = vpop.permute.xlu0 %1261 }
 0x67d   : > { %v1267_v39 = vsel %vm1058_vm1, %v1262_v38, 0 }
 0x67e   : > { %2426 = vmatpush3.bf16.msra.mxu1 %v1267_v39 }
 0x67f   : > { %2437 = vmatprep.subr.bf16.mxu1 %v2964_v0 }
 0x680   : > { %v1403_v40 = vpop.permute.xlu0 %1402 }
 0x681   : > { %1405 = vxpose.xlu0.b32.start.end [1/1] (short) (narrow) %v1403_v40, 8 }
 0x684   : > { %v1439_v50 = vpop.permute.xlu0 %1438 }
 0x686   : > { %v2682_v41 = vpop.eup %2681 }
 0x687   : > { %v1258_v43 = vmul.f32 %v2682_v41, %v2680_v35 }
 0x689   : > { %v1259_v44 = vpack.c.bf16 %v1258_v43, %v1258_v43 }
 0x68b   : > { %2428 = vmatmul.mubr.msk.bf16.vlgmr.msra.gmra.mxu1 %vm1054_vm2, %v1259_v44 }
 0x68c   : > { %2438 = vmatpush3.bf16.msra.mxu1 %v1360_v46  ;;  %2439 = vmatprep.mubr.msk.bf16.mxu1 %vm2965_vm0, %v2964_v0 }
 0x68d   : > { %2449 = vmatprep.subr.bf16.mxu1 %v2964_v0 }
 0x693   : > { %2440 = vmatmul.mubr.msk.bf16.vlgmr.msra.gmra.mxu1 %vm1054_vm2, %v1161_v47 }
 0x694   : > { %2451 = vmatprep.mubr.msk.bf16.mxu1 %vm2965_vm0, %v2964_v0 }
 0x6aa   : > { %1594 = vrot.lane.b32.xlu0 %v3317_v45, %s2968_s26 }
 0x6fd   : > { %v1421_v51 = vpop.trf.xlu0 }
 0x6fe   : > { %v1437_v52 = vpack.c.bf16 %v1421_v51, %v1421_v51 }
 0x700   : > { %v1444_v54 = vsel %vm1058_vm1, %v1437_v52, 0 }
 0x71c   : > { %v1595_v18 = vpop.permute.xlu0 %1594 }
 0x74b   : > { %v1303_v53 = vpop.f32.mrf.mxu1 }
 0x74c   : > { %v1309_v55 = vpack.c.bf16 %v1303_v53, %v1303_v53 }
 0x74d   : > { %v2429_v56 = vpop.f32.mrf.mxu1 }
 0x74e   : > { %2434 = vmatmul.mubr.msk.bf16.vlgmr.msra.gmra.mxu0 %vm1054_vm2, %v1309_v55  ;;  %v1019_v56 = vld [vmem:[#allocation10 + $0xc] sm:$0xf] }
 0x74f   : > { %v1306_v57 = vpop.f32.mrf.mxu1  ;;  %2444 = vmatpush3.bf16.msra.mxu0 %v1444_v54  ;;  %2445 = vmatprep.mubr.msk.bf16.mxu0 %vm2965_vm0, %v2964_v0 }
 0x750   : > { %2455 = vmatprep.subr.bf16.mxu0 %v2964_v0  ;;  %v1743_v57 = vsel %vm1058_vm1, %v1019_v56, 0 }
 0x751   : > { %v2430_v45 = vpop.f32.mrf.mxu1 }
 0x753   : > { %v3380_v58 = vpop.f32.mrf.mxu1 }
 0x755   : > { %v2441_v59 = vpop.f32.mrf.mxu1 }
 0x756   : > { %2446 = vmatmul.mubr.msk.bf16.vlgmr.msra.gmra.mxu0 %vm1054_vm2, %v1439_v50 }
 0x757   : > { %v1399_v60 = vpop.f32.mrf.mxu1  ;;  %2457 = vmatprep.mubr.msk.bf16.mxu0 %vm2965_vm0, %v2964_v0 }
 0x759   : > { %v2442_v61 = vpop.f32.mrf.mxu1 }
 0x75a   : > { %v2657_v61 = vld [vmem:[#allocation11 + $0x38] sm:$0xff]  }
 0x80e   : > { %v3385_v63 = vpop.f32.mrf.mxu0 }
 0x80f   : > { %v1397_v43 = vadd.f32 %v3380_v58, %v3385_v63 }
 0x810   : > { %v2435_v3 = vpop.f32.mrf.mxu0 }
 0x812   : > { %v1353_v4 = vpop.f32.mrf.mxu0 }
 0x813   : > { %v2253_v4 = vld [vmem:[%s3518_s8] ss:$0 sm:$0xff] }
 0x814   : > { %v2436_v5 = vpop.f32.mrf.mxu0 }
 0x816   : > { %v1480_v6 = vpop.f32.mrf.mxu0 }
 0x817   : > { %v1486_v7 = vsel %vm1054_vm2, %v1480_v6, -inf }
 0x818   : > { %1487 = vmax.xlane.f32.xlu1 %v1486_v7  ;;  %v2447_v8 = vpop.f32.mrf.mxu0 }
 0x81a   : > { %v1483_v9 = vpop.f32.mrf.mxu0 }
 0x81c   : > { %v2448_v10 = vpop.f32.mrf.mxu0 }
 0x829   : > { %1498 = vrot.lane.b32.xlu1 %v3328_v62, %s2967_s18  ;;  %s2275_s18 = sshll.u32 %s3081_s0, 7  ;;  %s2052_s0 = scalar_lea.sflag [#allocation4], %s3244_s23 }
 0x82a   : > { %s3467_s15 = scalar_lea.hbm %s3575_s13, %s2275_s18 }
 0x8a1   : > { %v1488_v11 = vpop.xlane.xlu1 %1487 }
 0x8a2   : > { %v1489_v12 = vsub.f32 %v1480_v6, %v1488_v11  ;;  %v2658_v11 = vld [vmem:[#allocation11 + $0x30] sm:$0xff]  }
 0x8a4   : > { %v1490_v13 = vmul.f32 1.442695, %v1489_v12  ;;  %v2659_v12 = vld [vmem:[#allocation11 + $0x28] sm:$0xff]  }
 0x8a5   : > { %v1499_v14 = vpop.permute.xlu1 %1498 }
 0x8a6   : > { %2683 = vpow2.f32 %v1490_v13  ;;  %v1504_v15 = vsel %vm1058_vm1, %v1499_v14, 0  ;;  %v2660_v13 = vld [vmem:[#allocation11 + $0x20] sm:$0xff]   ;;  %v2662_v14 = vld [vmem:[#allocation11 + $0x10] sm:$0xff]  }
 0x8a7   : > { %2450 = vmatpush3.bf16.msra.mxu1 %v1504_v15  ;;  %v2663_v15 = vld [vmem:[#allocation11 + $0x8] sm:$0xff]  }
 0x8a8   : > { %2461 = vmatprep.subr.bf16.mxu1 %v2964_v0 }
 0x8b3   : > { %v2684_v16 = vpop.eup %2683 }
 0x8b4   : > { %v1492_v17 = vsel %vm1054_vm2, %v2684_v16, 0.0 }
 0x8b5   : > { %1493 = vadd.xlane.f32.xlu1 %v1492_v17  ;;  %v2665_v17 = vld [vmem:[#allocation13 + $0x38] sm:$0xff]  }
 0x8c6   : > { %1630 = vrot.lane.b32.xlu1 %v3331_v2, %s2968_s26  ;;  %v1018_v2 = vld [vmem:[#allocation10 + $0x8] sm:$0xf] }
 0x8c7   : > { %v1551_v27 = vsel %vm1058_vm1, %v1018_v2, 0 }
 0x8c8   : > { %2456 = vmatpush3.bf16.msra.mxu0 %v1551_v27 }
 0x8c9   : > { %2467 = vmatprep.subr.bf16.mxu0 %v2964_v0 }
 0x8ef   : > { %1597 = vxpose.xlu1.b32.start.end [1/1] (short) (narrow) %v1595_v18, 8  ;;  %v2666_v18 = vld [vmem:[#allocation13 + $0x30] sm:$0xff]  }
 0x93e   : > { %v1494_v19 = vpop.xlane.xlu1 %1493 }
 0x93f   : > { %2685 = vrcp.f32 %v1494_v19  ;;  %v2667_v19 = vld [vmem:[#allocation13 + $0x28] sm:$0xff]  }
 0x942   : > { %v1631_v23 = vpop.permute.xlu1 %1630 }
 0x94c   : > { %v2686_v20 = vpop.eup %2685 }
 0x94d   : > { %v1496_v21 = vmul.f32 %v2686_v20, %v2684_v16  ;;  %v2664_v16 = vld [vmem:[#allocation11] sm:$0xff]  }
 0x94e   : > { %v2668_v20 = vld [vmem:[#allocation13 + $0x20] sm:$0xff]  }
 0x94f   : > { %v1497_v22 = vpack.c.bf16 %v1496_v21, %v1496_v21  ;;  %v2669_v21 = vld [vmem:[#allocation13 + $0x18] sm:$0xff]  }
 0x951   : > { %2452 = vmatmul.mubr.msk.bf16.vlgmr.msra.gmra.mxu1 %vm1054_vm2, %v1497_v22  ;;  %v2670_v22 = vld [vmem:[#allocation13 + $0x10] sm:$0xff]  }
 0x952   : > { %2463 = vmatprep.mubr.msk.bf16.mxu1 %vm2965_vm0, %v2964_v0 }
 0x96b   : > { %v1613_v24 = vpop.trf.xlu1 }
 0x96c   : > { %v1629_v25 = vpack.c.bf16 %v1613_v24, %v1613_v24 }
 0x96e   : > { %v1636_v26 = vsel %vm1058_vm1, %v1629_v25, 0 }
 0x96f   : > { %2462 = vmatpush3.bf16.msra.mxu1 %v1636_v26 }
 0x970   : > { %2473 = vmatprep.subr.bf16.mxu1 %v2964_v0 }
 0x972   : > { %2464 = vmatmul.mubr.msk.bf16.vlgmr.msra.gmra.mxu1 %vm1054_vm2, %v1631_v23 }
 0x973   : > { %2475 = vmatprep.mubr.msk.bf16.mxu1 %vm2965_vm0, %v2964_v0  ;;  %2474 = vmatpush3.bf16.msra.mxu1 %v1743_v57 }
 0x974   : > { %2499 = vmatprep.subr.bf16.mxu1 %v2964_v0 }
 0xa11   : > { %v1540_v28 = vpop.f32.mrf.mxu1 }
 0xa12   : > { %v1546_v29 = vpack.c.bf16 %v1540_v28, %v1540_v28 }
 0xa13   : > { %v2453_v30 = vpop.f32.mrf.mxu1 }
 0xa14   : > { %2458 = vmatmul.mubr.msk.bf16.vlgmr.msra.gmra.mxu0 %vm1054_vm2, %v1546_v29 }
 0xa15   : > { %v1543_v31 = vpop.f32.mrf.mxu1  ;;  %2469 = vmatprep.mubr.msk.bf16.mxu0 %vm2965_vm0, %v2964_v0 }
 0xa16   : > { %v2254_v31 = vld [vmem:[%s3521_s11] ss:$0 sm:$0xff] }
 0xa17   : > { %v2454_v32 = vpop.f32.mrf.mxu1 }
 0xa32   : > { %v1672_v33 = vpop.f32.mrf.mxu1 }
 0xa33   : > { %v1678_v34 = vsel %vm1054_vm2, %v1672_v33, -inf }
 0xa34   : > { %1679 = vmax.xlane.f32.xlu0 %v1678_v34  ;;  %v2465_v35 = vpop.f32.mrf.mxu1 }
 0xa36   : > { %v1675_v36 = vpop.f32.mrf.mxu1 }
 0xa38   : > { %v2466_v37 = vpop.f32.mrf.mxu1 }
 0xa39   : > { %v2671_v37 = vld [vmem:[#allocation13 + $0x8] sm:$0xff]  }
 0xabd   : > { %v1680_v38 = vpop.xlane.xlu0 %1679 }
 0xabe   : > { %v1681_v39 = vsub.f32 %v1672_v33, %v1680_v38  ;;  %v2255_v33 = vld [vmem:[%s3522_s12] ss:$0 sm:$0xff]  ;;  %v2672_v38 = vld [vmem:[#allocation13] sm:$0xff]  }
 0xac0   : > { %v1682_v40 = vmul.f32 1.442695, %v1681_v39  ;;  %v2256_v39 = vld [vmem:[%s3573_s19] ss:$0 sm:$0xff] }
 0xac2   : > { %2687 = vpow2.f32 %v1682_v40 }
 0xacf   : > { %v2688_v41 = vpop.eup %2687 }
 0xad0   : > { %v1684_v42 = vsel %vm1054_vm2, %v2688_v41, 0.0 }
 0xad1   : > { %1685 = vadd.xlane.f32.xlu0 %v1684_v42 }
 0xad4   : > { %v1587_v44 = vpop.f32.mrf.mxu0 }
 0xad5   : > { %v1593_v46 = vadd.f32 %v1587_v44, %v1397_v43 }
 0xad6   : > { %v2459_v47 = vpop.f32.mrf.mxu0 }
 0xad8   : > { %v1590_v48 = vpop.f32.mrf.mxu0 }
 0xad9   : > { %v2265_v48 = vld [vmem:[%s3574_s20] ss:$0 sm:$0xff] }
 0xada   : > { %v2460_v49 = vpop.f32.mrf.mxu0 }
 0xae7   : > { %1690 = vrot.lane.b32.xlu0 %v3328_v62, %s2968_s26  ;;  %s650_s26 = scalar_lea.vmem [#allocation14], %s2204_s17 }
 0xae8   : > { %s2065_s22 = sshll.u32 %s650_s26, 4  ;;  %s3469_s22 = int_to_ptr.vmem [resolvable:$true] %s2065_s22 }
 0xae9   : > { %s2877_s17 = scalar_lea.vmem %s3469_s22, 128  ;;  %p2884_p13 = scmp.lt.s32.totalorder %s3469_s22, %s2882_s28 }
 0xaea   : > { %p2878_p2 = scmp.ne.s32.totalorder %s3469_s22, %s2877_s17  ;;  %p2885_p5 = scmp.lt.s32.totalorder %s2883_s29, %s2877_s17 }
 0xaec   : > { %p2879_p8 = pnand %p2878_p2, %p3576_p10  ;;  %p2886_p9 = por %p2885_p5, %p2884_p13 }
 0xaee   : > { %p2880_p11 = pneg %p2879_p8 }
 0xaf0   : > { %p2887_p1 = pnand %p2886_p9, %p2880_p11 }
 0xb5a   : > { %v1686_v50 = vpop.xlane.xlu0 %1685 }
 0xb5b   : > { %2689 = vrcp.f32 %v1686_v50 }
 0xb5e   : > { %v1691_v51 = vpop.permute.xlu0 %1690 }
 0xb5f   : > { %v1696_v52 = vsel %vm1058_vm1, %v1691_v51, 0 }
 0xb60   : > { %2468 = vmatpush3.bf16.msra.mxu0 %v1696_v52 }
 0xb61   : > { %2479 = vmatprep.subr.bf16.mxu0 %v2964_v0 }
 0xb68   : > { %v2690_v53 = vpop.eup %2689 }
 0xb69   : > { %v1688_v54 = vmul.f32 %v2690_v53, %v2688_v41 }
 0xb6b   : > { %v1689_v55 = vpack.c.bf16 %v1688_v54, %v1688_v54 }
 0xb6d   : > { %2470 = vmatmul.mubr.msk.bf16.vlgmr.msra.gmra.mxu0 %vm1054_vm2, %v1689_v55 }
 0xb6e   : > { %2495 = vmatprep.mubr.msk.bf16.mxu0 %vm2965_vm0, %v2964_v0  ;;  %2480 = vmatpush3.bf16.msra.mxu0 %v2657_v61 }
 0xb6f   : > { %2481 = vmatprep.subr.bf16.mxu0 %v2964_v0 }
 0xb72   : > { %2482 = vmatpush3.bf16.msra.mxu0 %v2658_v11 }
 0xb73   : > { %2483 = vmatprep.subr.bf16.mxu0 %v2964_v0 }
 0xb76   : > { %2484 = vmatpush3.bf16.msra.mxu0 %v2659_v12 }
 0xb77   : > { %2485 = vmatprep.subr.bf16.mxu0 %v2964_v0 }
 0xb7a   : > { %2486 = vmatpush3.bf16.msra.mxu0 %v2660_v13 }
 0xb7b   : > { %2487 = vmatprep.subr.bf16.mxu0 %v2964_v0 }
 0xc2d   : > { %v1732_v62 = vpop.f32.mrf.mxu0 }
 0xc2e   : > { %v1738_v45 = vpack.c.bf16 %v1732_v62, %v1732_v62 }
 0xc2f   : > { %v2471_v58 = vpop.f32.mrf.mxu0 }
 0xc30   : > { %2476 = vmatmul.mubr.msk.bf16.vlgmr.msra.gmra.mxu1 %vm1054_vm2, %v1738_v45 }
 0xc31   : > { %v1735_v59 = vpop.f32.mrf.mxu0  ;;  %2515 = vmatprep.mubr.msk.bf16.mxu1 %vm2965_vm0, %v2964_v0  ;;  %2500 = vmatpush3.bf16.msra.mxu1 %v2665_v17 }
 0xc32   : > { %2501 = vmatprep.subr.bf16.mxu1 %v2964_v0 }
 0xc33   : > { %v2472_v60 = vpop.f32.mrf.mxu0 }
 0xc35   : > { %2502 = vmatpush3.bf16.msra.mxu1 %v2666_v18 }
 0xc36   : > { %2503 = vmatprep.subr.bf16.mxu1 %v2964_v0 }
 0xc39   : > { %2504 = vmatpush3.bf16.msra.mxu1 %v2667_v19 }
 0xc3a   : > { %2505 = vmatprep.subr.bf16.mxu1 %v2964_v0 }
 0xc3d   : > { %2506 = vmatpush3.bf16.msra.mxu1 %v2668_v20 }
 0xc3e   : > { %2507 = vmatprep.subr.bf16.mxu1 %v2964_v0 }
 0xc41   : > { %2508 = vmatpush3.bf16.msra.mxu1 %v2669_v21 }
 0xc42   : > { %2509 = vmatprep.subr.bf16.mxu1 %v2964_v0 }
 0xc45   : > { %2510 = vmatpush3.bf16.msra.mxu1 %v2670_v22 }
 0xc46   : > { %2511 = vmatprep.subr.bf16.mxu1 %v2964_v0 }
 0xc49   : > { %2512 = vmatpush3.bf16.msra.mxu1 %v2671_v37 }
 0xc4a   : > { %2513 = vmatprep.subr.bf16.mxu1 %v2964_v0 }
 0xc4d   : > { %2514 = vmatpush3.bf16.msra.mxu1 %v2672_v38 }
 0xcf0   : > { %v1779_v63 = vpop.f32.mrf.mxu1 }
 0xcf1   : > { %v1785_v3 = vadd.f32 %v1779_v63, %v1593_v46 }
 0xcf2   : > { %v2477_v5 = vpop.f32.mrf.mxu1 }
 0xcf3   : > { %v1786_v6 = vadd.f32 %v1785_v3, %v3268_v1  ;;  %v2661_v1 = vld [vmem:[#allocation11 + $0x18] sm:$0xff]  }
 0xcf4   : > { %v1782_v7 = vpop.f32.mrf.mxu1  ;;  %2488 = vmatpush3.bf16.msra.mxu0 %v2661_v1 }
 0xcf5   : > { %v3429_v8 = vadd.f32 %v2253_v4, %v1786_v6  ;;  %2489 = vmatprep.subr.bf16.mxu0 %v2964_v0 }
 0xcf6   : > { %v2478_v9 = vpop.f32.mrf.mxu1 }
 0xcf7   : > { %1797 = vadd.xlane.f32.xlu1 %v3429_v8  ;;  %v1799_v10 = vmul.f32 %v3429_v8, %v3429_v8 }
 0xcf8   : > { %2490 = vmatpush3.bf16.msra.mxu0 %v2662_v14 }
 0xcf9   : > { %1800 = vadd.xlane.f32.xlu0 %v1799_v10  ;;  %2491 = vmatprep.subr.bf16.mxu0 %v2964_v0 }
 0xcfc   : > { %2492 = vmatpush3.bf16.msra.mxu0 %v2663_v15 }
 0xcfd   : > { %2493 = vmatprep.subr.bf16.mxu0 %v2964_v0 }
 0xd00   : > { %2494 = vmatpush3.bf16.msra.mxu0 %v2664_v16 }
 0xd80   : > { %v1798_v23 = vpop.xlane.xlu1 %1797 }
 0xd81   : > { %v1802_v24 = vmul.f32 0.03125, %v1798_v23 }
 0xd82   : > { %v1801_v25 = vpop.xlane.xlu0 %1800 }
 0xd83   : > { %v1804_v26 = vmul.f32 %v1802_v24, %v1802_v24  ;;  %v1803_v2 = vmul.f32 0.03125, %v1801_v25  ;;  %v1806_v29 = vsub.f32 %v3429_v8, %v1802_v24 }
 0xd85   : > { %v1805_v27 = vsub.f32 %v1803_v2, %v1804_v26 }
 0xd87   : > { %v1807_v28 = vadd.f32 1e-05, %v1805_v27 }
 0xd89   : > { %2691 = vrsqrt.f32 %v1807_v28 }
 0xd96   : > { %v2692_v30 = vpop.eup %2691 }
 0xd97   : > { %v1809_v32 = vmul.f32 %v2692_v30, %v1806_v29 }
 0xd99   : > { %v1816_v34 = vmul.f32 %v2254_v31, %v1809_v32 }
 0xd9b   : > { %v1823_v35 = vadd.f32 %v2255_v33, %v1816_v34 }
 0xd9d   : > { %v1824_v36 = vpack.c.bf16 %v1823_v35, %v1823_v35 }
 0xd9f   : > { %2496 = vmatmul.mubr.bf16.vlgmr.msra.gmra.mxu0 %v1824_v36 }
 0xe5f   : > { %v1930_v40 = vpop.f32.mrf.mxu0 }
 0xe60   : > { %v1931_v41 = vadd.f32 %v2256_v39, %v1930_v40 }
 0xe61   : > { %v2497_v42 = vpop.f32.mrf.mxu0 }
 0xe62   : > { %v1936_v43 = vmax.f32 %v1931_v41, 0.0 }
 0xe63   : > { %v1933_v44 = vpop.f32.mrf.mxu0 }
 0xe64   : > { %v1937_v46 = vpack.c.bf16 %v1936_v43, %v1936_v43 }
 0xe65   : > { %v2498_v47 = vpop.f32.mrf.mxu0 }
 0xe66   : > { %2516 = vmatmul.mubr.bf16.vlgmr.msra.gmra.mxu1 %v1937_v46 }
 0xf26   : > { %v2043_v0 = vpop.f32.mrf.mxu1 }
 0xf27   : > { %v2044_v49 = vadd.f32 %v2265_v48, %v2043_v0 }
 0xf28   : > { %v2517_v50 = vpop.f32.mrf.mxu1 }
 0xf29   : > { %v2049_v51 = vadd.f32 %v2044_v49, %v3429_v8 }
 0xf2a   : > { %v2046_v52 = vpop.f32.mrf.mxu1 }
 0xf2b   : > { %2050 = vst [vmem:[%s650_s26] sm:$0xff] %v2049_v51 }
 0xf2c   : > { %v2518_v53 = vpop.f32.mrf.mxu1 }
 0xf2d   : > { %2890 = shalt.err (!%p2887_p1)
}
 0xf2e   : > { %s2891_s19 = scalar_lea.hbm %s3467_s15, 128  ;;  %s2895_s1 = scalar_lea.hbm %s3575_s13, 256 }
 0xf2f   : > { %p2892_p3 = scmp.ne.s32.totalorder %s3467_s15, %s2891_s19  ;;  %p2896_p12 = scmp.lt.s32.totalorder %s3467_s15, %s3575_s13 }
 0xf30   : > { %p2897_p0 = scmp.lt.s32.totalorder %s2895_s1, %s2891_s19 }
 0xf31   : > { %p2893_p4 = pnand %p2892_p3, %p3576_p10 }
 0xf32   : > { %p2898_p7 = por %p2897_p0, %p2896_p12 }
 0xf33   : > { %p2894_p6 = pneg %p2893_p4 }
 0xf35   : > { %p2899_p2 = pnand %p2898_p7, %p2894_p6 }
 0xf37   : > { %2902 = shalt.err (!%p2899_p2)
}
 0xf38   : > { %2545 = dma.vmem_to_hbm [thread:$0]  (%p3576_p10), %s3469_s22, 128, %s3467_s15, %s2052_s0  }
 0xf39 PF: > { %s2077_s26 = sand.u32 1, %s2941_s24   ;;  %p3577_p8 = scmp.ne.s32.totalorder %s3562_s21, 0 }
 0xf3a   : > { %p3578_p11 = scmp.ge.s32.totalorder %s2953_s27, 2  ;;  %s2078_s5 = scalar_lea.sflag [#allocation4], %s2077_s26 }
 0xf3c   : > { %p2571_p13 = pnand %p3578_p11, %p3577_p8 }
 0xf3e   : > { %p2572_p5 = pneg %p2571_p13 }
 0xf40   : > { %2936 = dma.done.wait (%p2572_p5), %s2078_s5, 128  }
 0xf41   : > { %2938 = vsyncadd (%p2572_p5), %s2078_s5, 4294967168  ;;  %s3579_s27 = sld [smem:[#allocation21_spill]]  ;;  %s3582_s24 = smov %s2945_s25 }
 0xf42   : > { %s3580_s7 = sld [smem:[#allocation20_spill]] }
 0xf43   : > { %s3581_s26 = sld [smem:[#allocation22_spill]] }
 0xf47   : > { %p33_p9 = scmp.ge.s32.totalorder %s3579_s27, 4  }
 0xf48   : > { %s3583_s25 = smov %s3580_s7 }
 0xf49   :  { %35 = sbr.rel (!%p33_p9) target bundleno = 19 (0x13), region = 157 }
 0xf4e   :  { %2083 = vsyncpa [#allocation3], 1 }
 0xf4f   :  { %2085 = vsyncpa [#allocation3 + $0x1], 1 }
 0xf50   :  { %2086 = vsyncpa [#allocation6], 1 }
 0xf51   :  { %2087 = vsyncpa [#allocation9], 1 }
 0xf52   :  { %2088 = vsyncpa [#allocation12], 1 }
 0xf53   :  { %2089 = vsyncpa [#allocation4], 1 }
 0xf54   :  { %2091 = vsyncpa [#allocation4 + $0x1], 1 }

</bundles_post_ra>
